<compile_context>
chip_gen: v7x
topology: tpu7x:2x2x1
jax: 0.10.0
libtpu: 0.0.40
codegen_flags: <defaults>
</compile_context>

<pallas_src>
import jax
import jax.numpy as jnp
from jax import lax
from jax.experimental import pallas as pl
from jax.experimental.pallas import tpu as pltpu


def retain_kernel(x_ref,                       # (T, B, I)
                  w_emb_ref, b_emb_ref,        # (I, E), (1, E)
                  w_xg_ref, b_xg_ref,          # (E, 3H), (1, 3H)  fused input proj (biases folded)
                  w_hh_ref, b_hn_ref,          # (H, 3H), (1, H)   block-diag recurrence; n-gate hidden bias
                  w_alpha_ref, b_alpha_ref,    # (1, H), (1, 1)    zero-padded over the var-GRU half
                  w_beta_ref, b_beta_ref,      # (H, E), (1, E)    zero-padded over the visit-GRU half
                  w_out_ref, b_out_ref,        # (1, E), (1, 1)
                  out_ref,                     # (B, 1)
                  emb_ref, xg_ref, h_ref):     # VMEM scratch: (T,B,E), (T,B,3H), (T,B,H)
    T, B, I = x_ref.shape
    E = w_emb_ref.shape[1]
    H = w_hh_ref.shape[0]

    # ---- embedding: Linear(I, E); emb_dropout == identity at inference ----
    x2d = x_ref[...].reshape(T * B, I)
    emb2d = (jnp.dot(x2d, w_emb_ref[...], preferred_element_type=jnp.float32)
             + b_emb_ref[...])
    emb_ref[...] = emb2d.reshape(T, B, E)

    # ---- hoisted input projections for BOTH GRUs (one matmul, biases folded) ----
    xg2d = (jnp.dot(emb2d, w_xg_ref[...], preferred_element_type=jnp.float32)
            + b_xg_ref[...])
    xg_ref[...] = xg2d.reshape(T, B, 3 * H)

    # ---- fused recurrence: both GRUs in one loop, one MXU push per step ----
    w_hh = w_hh_ref[...]
    b_hn = jnp.broadcast_to(b_hn_ref[...], (B, H))   # hoisted broadcast (once)

    def step(t, h):
        xg = xg_ref[t]                                               # (B, 3H)
        hg = jnp.dot(h, w_hh, preferred_element_type=jnp.float32)    # (B, 3H)
        r = jax.nn.sigmoid(xg[:, 0:H] + hg[:, 0:H])
        z = jax.nn.sigmoid(xg[:, H:2 * H] + hg[:, H:2 * H])
        n = jnp.tanh(xg[:, 2 * H:] + r * (hg[:, 2 * H:] + b_hn))
        h_new = (1.0 - z) * n + z * h
        h_ref[t] = h_new
        return h_new

    lax.fori_loop(0, T, step, jnp.zeros((B, H), jnp.float32), unroll=True)

    h_all = h_ref[...]                       # (T, B, H) = [hv | hr] along lanes
    h2d = h_all.reshape(T * B, H)

    # ---- visit-level attention: Linear(Hv, 1) as VPU mul + lane reduction ----
    alpha = (jnp.sum(h_all * w_alpha_ref[...], axis=-1, keepdims=True)
             + b_alpha_ref[...])                                     # (T, B, 1)
    # torch: softmax over dim=0 of (B, T, 1)  ==  batch axis  ==  axis=1 here
    a_max = jnp.max(alpha, axis=1, keepdims=True)
    a_exp = jnp.exp(alpha - a_max)
    visit_attn_w = a_exp / jnp.sum(a_exp, axis=1, keepdims=True)     # (T, B, 1)

    # ---- variable-level attention: Linear(Hr, E) then tanh ----
    beta = (jnp.dot(h2d, w_beta_ref[...], preferred_element_type=jnp.float32)
            + b_beta_ref[...]).reshape(T, B, E)
    var_attn_w = jnp.tanh(beta)                                      # (T, B, E)

    # ---- context vector: sum over time (torch dim=1); out_dropout = identity ----
    c = jnp.sum(visit_attn_w * var_attn_w * emb_ref[...], axis=0)    # (B, E)

    # ---- output: Linear(E, 1) + Sigmoid as VPU dot, then softmax over dim=1 ----
    logits = (jnp.sum(c * w_out_ref[...], axis=-1, keepdims=True)
              + b_out_ref[...])                                      # (B, 1)
    o = jax.nn.sigmoid(logits)
    o_max = jnp.max(o, axis=1, keepdims=True)
    o_exp = jnp.exp(o - o_max)
    out_ref[...] = o_exp / jnp.sum(o_exp, axis=1, keepdims=True)


def _fuse_params(p):
    """Build the fused / folded parameter tensors consumed by the kernel."""
    Hv = p["whh_v"].shape[0]
    Hr = p["whh_r"].shape[0]
    E = p["w_emb"].shape[1]
    f32 = jnp.float32

    def g(w, i, Hh):                      # slice gate i columns from (in, 3H)
        return w[:, i * Hh:(i + 1) * Hh]

    # input projections, interleaved gate order [r_v|r_r | z_v|z_r | n_v|n_r]
    w_xg = jnp.concatenate(
        [g(p["wih_v"], 0, Hv), g(p["wih_r"], 0, Hr),
         g(p["wih_v"], 1, Hv), g(p["wih_r"], 1, Hr),
         g(p["wih_v"], 2, Hv), g(p["wih_r"], 2, Hr)], axis=1)
    # fold b_ih (all gates) and b_hh (r, z gates only) into the hoisted bias
    b_xg = jnp.concatenate(
        [g(p["bih_v"], 0, Hv) + g(p["bhh_v"], 0, Hv),
         g(p["bih_r"], 0, Hr) + g(p["bhh_r"], 0, Hr),
         g(p["bih_v"], 1, Hv) + g(p["bhh_v"], 1, Hv),
         g(p["bih_r"], 1, Hr) + g(p["bhh_r"], 1, Hr),
         g(p["bih_v"], 2, Hv),
         g(p["bih_r"], 2, Hr)], axis=1)

    # block-diagonal recurrent weights, same gate order; rows = [hv | hr]
    def blockdiag(i):
        av = g(p["whh_v"], i, Hv)                                    # (Hv, Hv)
        ar = g(p["whh_r"], i, Hr)                                    # (Hr, Hr)
        top = jnp.concatenate([av, jnp.zeros((Hv, Hr), f32)], axis=1)
        bot = jnp.concatenate([jnp.zeros((Hr, Hv), f32), ar], axis=1)
        return jnp.concatenate([top, bot], axis=0)                   # (H, H)

    w_hh = jnp.concatenate([blockdiag(0), blockdiag(1), blockdiag(2)], axis=1)  # (H, 3H)
    b_hn = jnp.concatenate([g(p["bhh_v"], 2, Hv), g(p["bhh_r"], 2, Hr)], axis=1)  # (1, H)

    # zero-pad attention weights so both act on the fused hidden state [hv | hr]
    w_alpha = jnp.concatenate([p["w_alpha"], jnp.zeros((1, Hr), f32)], axis=1)   # (1, H)
    w_beta = jnp.concatenate([jnp.zeros((Hv, E), f32), p["w_beta"]], axis=0)     # (H, E)

    return (p["w_emb"], p["b_emb"], w_xg, b_xg, w_hh, b_hn,
            w_alpha, p["b_alpha"], w_beta, p["b_beta"], p["w_out"], p["b_out"])


def retain_forward(x_btI, params):
    """x_btI: (B, T, input_size) float32. Returns (B, 1) float32."""
    B, T, I = x_btI.shape
    E = params["w_emb"].shape[1]
    H = params["whh_v"].shape[0] + params["whh_r"].shape[0]

    x_tbI = jnp.transpose(x_btI, (1, 0, 2))      # time-major for the kernel
    args = _fuse_params(params)

    # Advisory cost estimate so XLA can schedule surrounding ops around the call.
    flops = 2 * T * B * (I * E + E * 3 * H + H * 3 * H + H * E + H) + 2 * B * E
    transcendentals = T * B * (3 * H + E) + 3 * B
    bytes_accessed = 4 * (int(x_tbI.size) + sum(int(a.size) for a in args) + B)

    # NOTE: no batch grid on purpose -- the visit attention softmax normalizes
    # over the batch axis (torch dim=0), so batch elements are coupled and
    # independent batch tiles would change the result.
    return pl.pallas_call(
        retain_kernel,
        out_shape=jax.ShapeDtypeStruct((B, 1), jnp.float32),
        scratch_shapes=[
            pltpu.VMEM((T, B, E), jnp.float32),       # embedded sequence
            pltpu.VMEM((T, B, 3 * H), jnp.float32),   # hoisted input-gate projections
            pltpu.VMEM((T, B, H), jnp.float32),       # fused hidden states [hv | hr]
        ],
        cost_estimate=pl.CostEstimate(flops=flops,
                                      transcendentals=transcendentals,
                                      bytes_accessed=bytes_accessed),
    )(x_tbI, *args)


def init_params(key, input_size, emb_size, visit_hidden, var_hidden):
    """Deterministic synthetic parameters, stored pre-transposed for the kernel."""
    ks = jax.random.split(key, 16)
    s = 0.1

    def rnd(k, shape):
        return (s * jax.random.normal(k, shape)).astype(jnp.float32)

    return {
        # nn.Linear(input_size, emb_size): W (E, I) -> pass (I, E)
        "w_emb": rnd(ks[0], (input_size, emb_size)),
        "b_emb": rnd(ks[1], (1, emb_size)),
        # visit GRU layer 0 (pre-transposed, gate order r|z|n along columns)
        "wih_v": rnd(ks[2], (emb_size, 3 * visit_hidden)),
        "whh_v": rnd(ks[3], (visit_hidden, 3 * visit_hidden)),
        "bih_v": rnd(ks[4], (1, 3 * visit_hidden)),
        "bhh_v": rnd(ks[5], (1, 3 * visit_hidden)),
        # visit-level attention: Linear(Hv, 1) -> weight stored as a (1, Hv) row
        "w_alpha": rnd(ks[6], (1, visit_hidden)),
        "b_alpha": rnd(ks[7], (1, 1)),
        # variable GRU layer 0
        "wih_r": rnd(ks[8], (emb_size, 3 * var_hidden)),
        "whh_r": rnd(ks[9], (var_hidden, 3 * var_hidden)),
        "bih_r": rnd(ks[10], (1, 3 * var_hidden)),
        "bhh_r": rnd(ks[11], (1, 3 * var_hidden)),
        # variable-level attention: Linear(Hr, E)
        "w_beta": rnd(ks[12], (var_hidden, emb_size)),
        "b_beta": rnd(ks[13], (1, emb_size)),
        # output layer: Linear(E, 1) -> weight stored as a (1, E) row
        "w_out": rnd(ks[14], (1, emb_size)),
        "b_out": rnd(ks[15], (1, 1)),
    }


if __name__ == "__main__":
    B, T = 2, 8
    input_size, emb_size = 16, 32
    visit_hidden, var_hidden = 32, 32

    key = jax.random.PRNGKey(0)
    k_x, k_p = jax.random.split(key)
    x = jax.random.normal(k_x, (B, T, input_size), dtype=jnp.float32)
    params = init_params(k_p, input_size, emb_size, visit_hidden, var_hidden)

    out = retain_forward(x, params)
    out = jax.block_until_ready(out)

    assert out.shape == (B, 1)
    # softmax over a size-1 dim must yield exactly 1.0 per row
    assert jnp.allclose(out, 1.0, atol=1e-5), out
    print("KERNEL_OK")
</pallas_src>

<mosaic_0001>
module attributes {stable_mosaic.version = 11 : i64} {
  func.func @retain_kernel(%arg0: memref<8x2x16xf32, #tpu.memory_space<vmem>>, %arg1: memref<16x32xf32, #tpu.memory_space<vmem>>, %arg2: memref<1x32xf32, #tpu.memory_space<vmem>>, %arg3: memref<32x192xf32, #tpu.memory_space<vmem>>, %arg4: memref<1x192xf32, #tpu.memory_space<vmem>>, %arg5: memref<64x192xf32, #tpu.memory_space<vmem>>, %arg6: memref<1x64xf32, #tpu.memory_space<vmem>>, %arg7: memref<1x64xf32, #tpu.memory_space<vmem>>, %arg8: memref<1x1xf32, #tpu.memory_space<vmem>>, %arg9: memref<64x32xf32, #tpu.memory_space<vmem>>, %arg10: memref<1x32xf32, #tpu.memory_space<vmem>>, %arg11: memref<1x32xf32, #tpu.memory_space<vmem>>, %arg12: memref<1x1xf32, #tpu.memory_space<vmem>>, %arg13: memref<2x1xf32, #tpu.memory_space<vmem>>, %arg14: memref<8x2x32xf32, #tpu.memory_space<vmem>>, %arg15: memref<8x2x192xf32, #tpu.memory_space<vmem>>, %arg16: memref<8x2x64xf32, #tpu.memory_space<vmem>>) attributes {dimension_semantics = [], scalar_prefetch = 0 : i64, scratch_operands = 3 : i64, tpu.core_type = #tpu.core_type<tc>} {
    %c0 = arith.constant 0 : index
    %c0_0 = arith.constant 0 : index
    %c0_1 = arith.constant 0 : index
    %0 = vector.load %arg0[%c0, %c0_0, %c0_1] : memref<8x2x16xf32, #tpu.memory_space<vmem>>, vector<8x2x16xf32>
    %1 = vector.shape_cast %0 : vector<8x2x16xf32> to vector<16x16xf32>
    %c0_2 = arith.constant 0 : index
    %c0_3 = arith.constant 0 : index
    %2 = vector.load %arg1[%c0_2, %c0_3] : memref<16x32xf32, #tpu.memory_space<vmem>>, vector<16x32xf32>
    %cst = arith.constant dense<0.000000e+00> : vector<16x32xf32>
    %3 = tpu.matmul %1, %2, %cst {dimension_numbers = #tpu.dot_dimension_numbers<[1], [0], [0], [1], [0, 0, 1, 1], [], []>} : vector<16x16xf32>, vector<16x32xf32>, vector<16x32xf32> -> vector<16x32xf32>
    %c0_4 = arith.constant 0 : index
    %c0_5 = arith.constant 0 : index
    %4 = vector.load %arg2[%c0_4, %c0_5] : memref<1x32xf32, #tpu.memory_space<vmem>>, vector<1x32xf32>
    %5 = vector.broadcast %4 : vector<1x32xf32> to vector<16x32xf32>
    %6 = arith.addf %3, %5 : vector<16x32xf32>
    %7 = vector.shape_cast %6 : vector<16x32xf32> to vector<8x2x32xf32>
    %c0_6 = arith.constant 0 : index
    %c0_7 = arith.constant 0 : index
    %c0_8 = arith.constant 0 : index
    %8 = vector.load %arg14[%c0_6, %c0_7, %c0_8] : memref<8x2x32xf32, #tpu.memory_space<vmem>>, vector<8x2x32xf32>
    tpu.vector_store %arg14[%c0_6, %c0_7, %c0_8], %7 {strides = array<i32>} : memref<8x2x32xf32, #tpu.memory_space<vmem>>, vector<8x2x32xf32>,
    %c0_9 = arith.constant 0 : index
    %c0_10 = arith.constant 0 : index
    %9 = vector.load %arg3[%c0_9, %c0_10] : memref<32x192xf32, #tpu.memory_space<vmem>>, vector<32x192xf32>
    %cst_11 = arith.constant dense<0.000000e+00> : vector<16x192xf32>
    %10 = tpu.matmul %6, %9, %cst_11 {dimension_numbers = #tpu.dot_dimension_numbers<[1], [0], [0], [1], [0, 0, 1, 1], [], []>} : vector<16x32xf32>, vector<32x192xf32>, vector<16x192xf32> -> vector<16x192xf32>
    %c0_12 = arith.constant 0 : index
    %c0_13 = arith.constant 0 : index
    %11 = vector.load %arg4[%c0_12, %c0_13] : memref<1x192xf32, #tpu.memory_space<vmem>>, vector<1x192xf32>
    %12 = vector.broadcast %11 : vector<1x192xf32> to vector<16x192xf32>
    %13 = arith.addf %10, %12 : vector<16x192xf32>
    %14 = vector.shape_cast %13 : vector<16x192xf32> to vector<8x2x192xf32>
    %c0_14 = arith.constant 0 : index
    %c0_15 = arith.constant 0 : index
    %c0_16 = arith.constant 0 : index
    %15 = vector.load %arg15[%c0_14, %c0_15, %c0_16] : memref<8x2x192xf32, #tpu.memory_space<vmem>>, vector<8x2x192xf32>
    tpu.vector_store %arg15[%c0_14, %c0_15, %c0_16], %14 {strides = array<i32>} : memref<8x2x192xf32, #tpu.memory_space<vmem>>, vector<8x2x192xf32>,
    %c0_17 = arith.constant 0 : index
    %c0_18 = arith.constant 0 : index
    %16 = vector.load %arg5[%c0_17, %c0_18] : memref<64x192xf32, #tpu.memory_space<vmem>>, vector<64x192xf32>
    %c0_19 = arith.constant 0 : index
    %c0_20 = arith.constant 0 : index
    %17 = vector.load %arg6[%c0_19, %c0_20] : memref<1x64xf32, #tpu.memory_space<vmem>>, vector<1x64xf32>
    %18 = vector.shape_cast %17 : vector<1x64xf32> to vector<1x64xf32>
    %19 = vector.broadcast %18 : vector<1x64xf32> to vector<2x64xf32>
    %cst_21 = arith.constant 0.000000e+00 : f32
    %20 = vector.broadcast %cst_21 : f32 to vector<2x64xf32>
    %c0_i32 = arith.constant 0 : i32
    %21 = arith.index_cast %c0_i32 : i32 to index
    %c0_22 = arith.constant 0 : index
    %c0_23 = arith.constant 0 : index
    %22 = vector.load %arg15[%21, %c0_22, %c0_23] : memref<8x2x192xf32, #tpu.memory_space<vmem>>, vector<1x2x192xf32>
    %23 = vector.shape_cast %22 : vector<1x2x192xf32> to vector<2x192xf32>
    %cst_24 = arith.constant dense<0.000000e+00> : vector<2x192xf32>
    %24 = tpu.matmul %20, %16, %cst_24 {dimension_numbers = #tpu.dot_dimension_numbers<[1], [0], [0], [1], [0, 0, 1, 1], [], []>} : vector<2x64xf32>, vector<64x192xf32>, vector<2x192xf32> -> vector<2x192xf32>
    %25 = vector.extract_strided_slice %23 {offsets = [0, 0], sizes = [2, 64], strides = [1, 1]} : vector<2x192xf32> to vector<2x64xf32>
    %26 = vector.extract_strided_slice %24 {offsets = [0, 0], sizes = [2, 64], strides = [1, 1]} : vector<2x192xf32> to vector<2x64xf32>
    %27 = arith.addf %25, %26 : vector<2x64xf32>
    %28 = arith.negf %27 : vector<2x64xf32>
    %29 = math.exp %28 : vector<2x64xf32>
    %cst_25 = arith.constant 1.000000e+00 : f32
    %30 = vector.broadcast %cst_25 : f32 to vector<2x64xf32>
    %31 = arith.addf %30, %29 : vector<2x64xf32>
    %32 = arith.divf %30, %31 : vector<2x64xf32>
    %33 = vector.extract_strided_slice %23 {offsets = [0, 64], sizes = [2, 64], strides = [1, 1]} : vector<2x192xf32> to vector<2x64xf32>
    %34 = vector.extract_strided_slice %24 {offsets = [0, 64], sizes = [2, 64], strides = [1, 1]} : vector<2x192xf32> to vector<2x64xf32>
    %35 = arith.addf %33, %34 : vector<2x64xf32>
    %36 = arith.negf %35 : vector<2x64xf32>
    %37 = math.exp %36 : vector<2x64xf32>
    %cst_26 = arith.constant 1.000000e+00 : f32
    %38 = vector.broadcast %cst_26 : f32 to vector<2x64xf32>
    %39 = arith.addf %38, %37 : vector<2x64xf32>
    %40 = arith.divf %38, %39 : vector<2x64xf32>
    %41 = vector.extract_strided_slice %23 {offsets = [0, 128], sizes = [2, 64], strides = [1, 1]} : vector<2x192xf32> to vector<2x64xf32>
    %42 = vector.extract_strided_slice %24 {offsets = [0, 128], sizes = [2, 64], strides = [1, 1]} : vector<2x192xf32> to vector<2x64xf32>
    %43 = arith.addf %42, %19 : vector<2x64xf32>
    %44 = arith.mulf %32, %43 : vector<2x64xf32>
    %45 = arith.addf %41, %44 : vector<2x64xf32>
    %46 = math.tanh %45 : vector<2x64xf32>
    %cst_27 = arith.constant 1.000000e+00 : f32
    %47 = vector.broadcast %cst_27 : f32 to vector<2x64xf32>
    %48 = arith.subf %47, %40 : vector<2x64xf32>
    %49 = arith.mulf %48, %46 : vector<2x64xf32>
    %50 = arith.mulf %40, %20 : vector<2x64xf32>
    %51 = arith.addf %49, %50 : vector<2x64xf32>
    %52 = arith.index_cast %c0_i32 : i32 to index
    %c0_28 = arith.constant 0 : index
    %c0_29 = arith.constant 0 : index
    %53 = vector.load %arg16[%52, %c0_28, %c0_29] : memref<8x2x64xf32, #tpu.memory_space<vmem>>, vector<1x2x64xf32>
    %54 = vector.shape_cast %53 : vector<1x2x64xf32> to vector<2x64xf32>
    %55 = vector.shape_cast %51 : vector<2x64xf32> to vector<1x2x64xf32>
    tpu.vector_store %arg16[%52, %c0_28, %c0_29], %55 {strides = array<i32>} : memref<8x2x64xf32, #tpu.memory_space<vmem>>, vector<1x2x64xf32>,
    %c1_i32 = arith.constant 1 : i32
    %56 = arith.index_cast %c1_i32 : i32 to index
    %c0_30 = arith.constant 0 : index
    %c0_31 = arith.constant 0 : index
    %57 = vector.load %arg15[%56, %c0_30, %c0_31] : memref<8x2x192xf32, #tpu.memory_space<vmem>>, vector<1x2x192xf32>
    %58 = vector.shape_cast %57 : vector<1x2x192xf32> to vector<2x192xf32>
    %cst_32 = arith.constant dense<0.000000e+00> : vector<2x192xf32>
    %59 = tpu.matmul %51, %16, %cst_32 {dimension_numbers = #tpu.dot_dimension_numbers<[1], [0], [0], [1], [0, 0, 1, 1], [], []>} : vector<2x64xf32>, vector<64x192xf32>, vector<2x192xf32> -> vector<2x192xf32>
    %60 = vector.extract_strided_slice %58 {offsets = [0, 0], sizes = [2, 64], strides = [1, 1]} : vector<2x192xf32> to vector<2x64xf32>
    %61 = vector.extract_strided_slice %59 {offsets = [0, 0], sizes = [2, 64], strides = [1, 1]} : vector<2x192xf32> to vector<2x64xf32>
    %62 = arith.addf %60, %61 : vector<2x64xf32>
    %63 = arith.negf %62 : vector<2x64xf32>
    %64 = math.exp %63 : vector<2x64xf32>
    %cst_33 = arith.constant 1.000000e+00 : f32
    %65 = vector.broadcast %cst_33 : f32 to vector<2x64xf32>
    %66 = arith.addf %65, %64 : vector<2x64xf32>
    %67 = arith.divf %65, %66 : vector<2x64xf32>
    %68 = vector.extract_strided_slice %58 {offsets = [0, 64], sizes = [2, 64], strides = [1, 1]} : vector<2x192xf32> to vector<2x64xf32>
    %69 = vector.extract_strided_slice %59 {offsets = [0, 64], sizes = [2, 64], strides = [1, 1]} : vector<2x192xf32> to vector<2x64xf32>
    %70 = arith.addf %68, %69 : vector<2x64xf32>
    %71 = arith.negf %70 : vector<2x64xf32>
    %72 = math.exp %71 : vector<2x64xf32>
    %cst_34 = arith.constant 1.000000e+00 : f32
    %73 = vector.broadcast %cst_34 : f32 to vector<2x64xf32>
    %74 = arith.addf %73, %72 : vector<2x64xf32>
    %75 = arith.divf %73, %74 : vector<2x64xf32>
    %76 = vector.extract_strided_slice %58 {offsets = [0, 128], sizes = [2, 64], strides = [1, 1]} : vector<2x192xf32> to vector<2x64xf32>
    %77 = vector.extract_strided_slice %59 {offsets = [0, 128], sizes = [2, 64], strides = [1, 1]} : vector<2x192xf32> to vector<2x64xf32>
    %78 = arith.addf %77, %19 : vector<2x64xf32>
    %79 = arith.mulf %67, %78 : vector<2x64xf32>
    %80 = arith.addf %76, %79 : vector<2x64xf32>
    %81 = math.tanh %80 : vector<2x64xf32>
    %cst_35 = arith.constant 1.000000e+00 : f32
    %82 = vector.broadcast %cst_35 : f32 to vector<2x64xf32>
    %83 = arith.subf %82, %75 : vector<2x64xf32>
    %84 = arith.mulf %83, %81 : vector<2x64xf32>
    %85 = arith.mulf %75, %51 : vector<2x64xf32>
    %86 = arith.addf %84, %85 : vector<2x64xf32>
    %87 = arith.index_cast %c1_i32 : i32 to index
    %c0_36 = arith.constant 0 : index
    %c0_37 = arith.constant 0 : index
    %88 = vector.load %arg16[%87, %c0_36, %c0_37] : memref<8x2x64xf32, #tpu.memory_space<vmem>>, vector<1x2x64xf32>
    %89 = vector.shape_cast %88 : vector<1x2x64xf32> to vector<2x64xf32>
    %90 = vector.shape_cast %86 : vector<2x64xf32> to vector<1x2x64xf32>
    tpu.vector_store %arg16[%87, %c0_36, %c0_37], %90 {strides = array<i32>} : memref<8x2x64xf32, #tpu.memory_space<vmem>>, vector<1x2x64xf32>,
    %c2_i32 = arith.constant 2 : i32
    %91 = arith.index_cast %c2_i32 : i32 to index
    %c0_38 = arith.constant 0 : index
    %c0_39 = arith.constant 0 : index
    %92 = vector.load %arg15[%91, %c0_38, %c0_39] : memref<8x2x192xf32, #tpu.memory_space<vmem>>, vector<1x2x192xf32>
    %93 = vector.shape_cast %92 : vector<1x2x192xf32> to vector<2x192xf32>
    %cst_40 = arith.constant dense<0.000000e+00> : vector<2x192xf32>
    %94 = tpu.matmul %86, %16, %cst_40 {dimension_numbers = #tpu.dot_dimension_numbers<[1], [0], [0], [1], [0, 0, 1, 1], [], []>} : vector<2x64xf32>, vector<64x192xf32>, vector<2x192xf32> -> vector<2x192xf32>
    %95 = vector.extract_strided_slice %93 {offsets = [0, 0], sizes = [2, 64], strides = [1, 1]} : vector<2x192xf32> to vector<2x64xf32>
    %96 = vector.extract_strided_slice %94 {offsets = [0, 0], sizes = [2, 64], strides = [1, 1]} : vector<2x192xf32> to vector<2x64xf32>
    %97 = arith.addf %95, %96 : vector<2x64xf32>
    %98 = arith.negf %97 : vector<2x64xf32>
    %99 = math.exp %98 : vector<2x64xf32>
    %cst_41 = arith.constant 1.000000e+00 : f32
    %100 = vector.broadcast %cst_41 : f32 to vector<2x64xf32>
    %101 = arith.addf %100, %99 : vector<2x64xf32>
    %102 = arith.divf %100, %101 : vector<2x64xf32>
    %103 = vector.extract_strided_slice %93 {offsets = [0, 64], sizes = [2, 64], strides = [1, 1]} : vector<2x192xf32> to vector<2x64xf32>
    %104 = vector.extract_strided_slice %94 {offsets = [0, 64], sizes = [2, 64], strides = [1, 1]} : vector<2x192xf32> to vector<2x64xf32>
    %105 = arith.addf %103, %104 : vector<2x64xf32>
    %106 = arith.negf %105 : vector<2x64xf32>
    %107 = math.exp %106 : vector<2x64xf32>
    %cst_42 = arith.constant 1.000000e+00 : f32
    %108 = vector.broadcast %cst_42 : f32 to vector<2x64xf32>
    %109 = arith.addf %108, %107 : vector<2x64xf32>
    %110 = arith.divf %108, %109 : vector<2x64xf32>
    %111 = vector.extract_strided_slice %93 {offsets = [0, 128], sizes = [2, 64], strides = [1, 1]} : vector<2x192xf32> to vector<2x64xf32>
    %112 = vector.extract_strided_slice %94 {offsets = [0, 128], sizes = [2, 64], strides = [1, 1]} : vector<2x192xf32> to vector<2x64xf32>
    %113 = arith.addf %112, %19 : vector<2x64xf32>
    %114 = arith.mulf %102, %113 : vector<2x64xf32>
    %115 = arith.addf %111, %114 : vector<2x64xf32>
    %116 = math.tanh %115 : vector<2x64xf32>
    %cst_43 = arith.constant 1.000000e+00 : f32
    %117 = vector.broadcast %cst_43 : f32 to vector<2x64xf32>
    %118 = arith.subf %117, %110 : vector<2x64xf32>
    %119 = arith.mulf %118, %116 : vector<2x64xf32>
    %120 = arith.mulf %110, %86 : vector<2x64xf32>
    %121 = arith.addf %119, %120 : vector<2x64xf32>
    %122 = arith.index_cast %c2_i32 : i32 to index
    %c0_44 = arith.constant 0 : index
    %c0_45 = arith.constant 0 : index
    %123 = vector.load %arg16[%122, %c0_44, %c0_45] : memref<8x2x64xf32, #tpu.memory_space<vmem>>, vector<1x2x64xf32>
    %124 = vector.shape_cast %123 : vector<1x2x64xf32> to vector<2x64xf32>
    %125 = vector.shape_cast %121 : vector<2x64xf32> to vector<1x2x64xf32>
    tpu.vector_store %arg16[%122, %c0_44, %c0_45], %125 {strides = array<i32>} : memref<8x2x64xf32, #tpu.memory_space<vmem>>, vector<1x2x64xf32>,
    %c3_i32 = arith.constant 3 : i32
    %126 = arith.index_cast %c3_i32 : i32 to index
    %c0_46 = arith.constant 0 : index
    %c0_47 = arith.constant 0 : index
    %127 = vector.load %arg15[%126, %c0_46, %c0_47] : memref<8x2x192xf32, #tpu.memory_space<vmem>>, vector<1x2x192xf32>
    %128 = vector.shape_cast %127 : vector<1x2x192xf32> to vector<2x192xf32>
    %cst_48 = arith.constant dense<0.000000e+00> : vector<2x192xf32>
    %129 = tpu.matmul %121, %16, %cst_48 {dimension_numbers = #tpu.dot_dimension_numbers<[1], [0], [0], [1], [0, 0, 1, 1], [], []>} : vector<2x64xf32>, vector<64x192xf32>, vector<2x192xf32> -> vector<2x192xf32>
    %130 = vector.extract_strided_slice %128 {offsets = [0, 0], sizes = [2, 64], strides = [1, 1]} : vector<2x192xf32> to vector<2x64xf32>
    %131 = vector.extract_strided_slice %129 {offsets = [0, 0], sizes = [2, 64], strides = [1, 1]} : vector<2x192xf32> to vector<2x64xf32>
    %132 = arith.addf %130, %131 : vector<2x64xf32>
    %133 = arith.negf %132 : vector<2x64xf32>
    %134 = math.exp %133 : vector<2x64xf32>
    %cst_49 = arith.constant 1.000000e+00 : f32
    %135 = vector.broadcast %cst_49 : f32 to vector<2x64xf32>
    %136 = arith.addf %135, %134 : vector<2x64xf32>
    %137 = arith.divf %135, %136 : vector<2x64xf32>
    %138 = vector.extract_strided_slice %128 {offsets = [0, 64], sizes = [2, 64], strides = [1, 1]} : vector<2x192xf32> to vector<2x64xf32>
    %139 = vector.extract_strided_slice %129 {offsets = [0, 64], sizes = [2, 64], strides = [1, 1]} : vector<2x192xf32> to vector<2x64xf32>
    %140 = arith.addf %138, %139 : vector<2x64xf32>
    %141 = arith.negf %140 : vector<2x64xf32>
    %142 = math.exp %141 : vector<2x64xf32>
    %cst_50 = arith.constant 1.000000e+00 : f32
    %143 = vector.broadcast %cst_50 : f32 to vector<2x64xf32>
    %144 = arith.addf %143, %142 : vector<2x64xf32>
    %145 = arith.divf %143, %144 : vector<2x64xf32>
    %146 = vector.extract_strided_slice %128 {offsets = [0, 128], sizes = [2, 64], strides = [1, 1]} : vector<2x192xf32> to vector<2x64xf32>
    %147 = vector.extract_strided_slice %129 {offsets = [0, 128], sizes = [2, 64], strides = [1, 1]} : vector<2x192xf32> to vector<2x64xf32>
    %148 = arith.addf %147, %19 : vector<2x64xf32>
    %149 = arith.mulf %137, %148 : vector<2x64xf32>
    %150 = arith.addf %146, %149 : vector<2x64xf32>
    %151 = math.tanh %150 : vector<2x64xf32>
    %cst_51 = arith.constant 1.000000e+00 : f32
    %152 = vector.broadcast %cst_51 : f32 to vector<2x64xf32>
    %153 = arith.subf %152, %145 : vector<2x64xf32>
    %154 = arith.mulf %153, %151 : vector<2x64xf32>
    %155 = arith.mulf %145, %121 : vector<2x64xf32>
    %156 = arith.addf %154, %155 : vector<2x64xf32>
    %157 = arith.index_cast %c3_i32 : i32 to index
    %c0_52 = arith.constant 0 : index
    %c0_53 = arith.constant 0 : index
    %158 = vector.load %arg16[%157, %c0_52, %c0_53] : memref<8x2x64xf32, #tpu.memory_space<vmem>>, vector<1x2x64xf32>
    %159 = vector.shape_cast %158 : vector<1x2x64xf32> to vector<2x64xf32>
    %160 = vector.shape_cast %156 : vector<2x64xf32> to vector<1x2x64xf32>
    tpu.vector_store %arg16[%157, %c0_52, %c0_53], %160 {strides = array<i32>} : memref<8x2x64xf32, #tpu.memory_space<vmem>>, vector<1x2x64xf32>,
    %c4_i32 = arith.constant 4 : i32
    %161 = arith.index_cast %c4_i32 : i32 to index
    %c0_54 = arith.constant 0 : index
    %c0_55 = arith.constant 0 : index
    %162 = vector.load %arg15[%161, %c0_54, %c0_55] : memref<8x2x192xf32, #tpu.memory_space<vmem>>, vector<1x2x192xf32>
    %163 = vector.shape_cast %162 : vector<1x2x192xf32> to vector<2x192xf32>
    %cst_56 = arith.constant dense<0.000000e+00> : vector<2x192xf32>
    %164 = tpu.matmul %156, %16, %cst_56 {dimension_numbers = #tpu.dot_dimension_numbers<[1], [0], [0], [1], [0, 0, 1, 1], [], []>} : vector<2x64xf32>, vector<64x192xf32>, vector<2x192xf32> -> vector<2x192xf32>
    %165 = vector.extract_strided_slice %163 {offsets = [0, 0], sizes = [2, 64], strides = [1, 1]} : vector<2x192xf32> to vector<2x64xf32>
    %166 = vector.extract_strided_slice %164 {offsets = [0, 0], sizes = [2, 64], strides = [1, 1]} : vector<2x192xf32> to vector<2x64xf32>
    %167 = arith.addf %165, %166 : vector<2x64xf32>
    %168 = arith.negf %167 : vector<2x64xf32>
    %169 = math.exp %168 : vector<2x64xf32>
    %cst_57 = arith.constant 1.000000e+00 : f32
    %170 = vector.broadcast %cst_57 : f32 to vector<2x64xf32>
    %171 = arith.addf %170, %169 : vector<2x64xf32>
    %172 = arith.divf %170, %171 : vector<2x64xf32>
    %173 = vector.extract_strided_slice %163 {offsets = [0, 64], sizes = [2, 64], strides = [1, 1]} : vector<2x192xf32> to vector<2x64xf32>
    %174 = vector.extract_strided_slice %164 {offsets = [0, 64], sizes = [2, 64], strides = [1, 1]} : vector<2x192xf32> to vector<2x64xf32>
    %175 = arith.addf %173, %174 : vector<2x64xf32>
    %176 = arith.negf %175 : vector<2x64xf32>
    %177 = math.exp %176 : vector<2x64xf32>
    %cst_58 = arith.constant 1.000000e+00 : f32
    %178 = vector.broadcast %cst_58 : f32 to vector<2x64xf32>
    %179 = arith.addf %178, %177 : vector<2x64xf32>
    %180 = arith.divf %178, %179 : vector<2x64xf32>
    %181 = vector.extract_strided_slice %163 {offsets = [0, 128], sizes = [2, 64], strides = [1, 1]} : vector<2x192xf32> to vector<2x64xf32>
    %182 = vector.extract_strided_slice %164 {offsets = [0, 128], sizes = [2, 64], strides = [1, 1]} : vector<2x192xf32> to vector<2x64xf32>
    %183 = arith.addf %182, %19 : vector<2x64xf32>
    %184 = arith.mulf %172, %183 : vector<2x64xf32>
    %185 = arith.addf %181, %184 : vector<2x64xf32>
    %186 = math.tanh %185 : vector<2x64xf32>
    %cst_59 = arith.constant 1.000000e+00 : f32
    %187 = vector.broadcast %cst_59 : f32 to vector<2x64xf32>
    %188 = arith.subf %187, %180 : vector<2x64xf32>
    %189 = arith.mulf %188, %186 : vector<2x64xf32>
    %190 = arith.mulf %180, %156 : vector<2x64xf32>
    %191 = arith.addf %189, %190 : vector<2x64xf32>
    %192 = arith.index_cast %c4_i32 : i32 to index
    %c0_60 = arith.constant 0 : index
    %c0_61 = arith.constant 0 : index
    %193 = vector.load %arg16[%192, %c0_60, %c0_61] : memref<8x2x64xf32, #tpu.memory_space<vmem>>, vector<1x2x64xf32>
    %194 = vector.shape_cast %193 : vector<1x2x64xf32> to vector<2x64xf32>
    %195 = vector.shape_cast %191 : vector<2x64xf32> to vector<1x2x64xf32>
    tpu.vector_store %arg16[%192, %c0_60, %c0_61], %195 {strides = array<i32>} : memref<8x2x64xf32, #tpu.memory_space<vmem>>, vector<1x2x64xf32>,
    %c5_i32 = arith.constant 5 : i32
    %196 = arith.index_cast %c5_i32 : i32 to index
    %c0_62 = arith.constant 0 : index
    %c0_63 = arith.constant 0 : index
    %197 = vector.load %arg15[%196, %c0_62, %c0_63] : memref<8x2x192xf32, #tpu.memory_space<vmem>>, vector<1x2x192xf32>
    %198 = vector.shape_cast %197 : vector<1x2x192xf32> to vector<2x192xf32>
    %cst_64 = arith.constant dense<0.000000e+00> : vector<2x192xf32>
    %199 = tpu.matmul %191, %16, %cst_64 {dimension_numbers = #tpu.dot_dimension_numbers<[1], [0], [0], [1], [0, 0, 1, 1], [], []>} : vector<2x64xf32>, vector<64x192xf32>, vector<2x192xf32> -> vector<2x192xf32>
    %200 = vector.extract_strided_slice %198 {offsets = [0, 0], sizes = [2, 64], strides = [1, 1]} : vector<2x192xf32> to vector<2x64xf32>
    %201 = vector.extract_strided_slice %199 {offsets = [0, 0], sizes = [2, 64], strides = [1, 1]} : vector<2x192xf32> to vector<2x64xf32>
    %202 = arith.addf %200, %201 : vector<2x64xf32>
    %203 = arith.negf %202 : vector<2x64xf32>
    %204 = math.exp %203 : vector<2x64xf32>
    %cst_65 = arith.constant 1.000000e+00 : f32
    %205 = vector.broadcast %cst_65 : f32 to vector<2x64xf32>
    %206 = arith.addf %205, %204 : vector<2x64xf32>
    %207 = arith.divf %205, %206 : vector<2x64xf32>
    %208 = vector.extract_strided_slice %198 {offsets = [0, 64], sizes = [2, 64], strides = [1, 1]} : vector<2x192xf32> to vector<2x64xf32>
    %209 = vector.extract_strided_slice %199 {offsets = [0, 64], sizes = [2, 64], strides = [1, 1]} : vector<2x192xf32> to vector<2x64xf32>
    %210 = arith.addf %208, %209 : vector<2x64xf32>
    %211 = arith.negf %210 : vector<2x64xf32>
    %212 = math.exp %211 : vector<2x64xf32>
    %cst_66 = arith.constant 1.000000e+00 : f32
    %213 = vector.broadcast %cst_66 : f32 to vector<2x64xf32>
    %214 = arith.addf %213, %212 : vector<2x64xf32>
    %215 = arith.divf %213, %214 : vector<2x64xf32>
    %216 = vector.extract_strided_slice %198 {offsets = [0, 128], sizes = [2, 64], strides = [1, 1]} : vector<2x192xf32> to vector<2x64xf32>
    %217 = vector.extract_strided_slice %199 {offsets = [0, 128], sizes = [2, 64], strides = [1, 1]} : vector<2x192xf32> to vector<2x64xf32>
    %218 = arith.addf %217, %19 : vector<2x64xf32>
    %219 = arith.mulf %207, %218 : vector<2x64xf32>
    %220 = arith.addf %216, %219 : vector<2x64xf32>
    %221 = math.tanh %220 : vector<2x64xf32>
    %cst_67 = arith.constant 1.000000e+00 : f32
    %222 = vector.broadcast %cst_67 : f32 to vector<2x64xf32>
    %223 = arith.subf %222, %215 : vector<2x64xf32>
    %224 = arith.mulf %223, %221 : vector<2x64xf32>
    %225 = arith.mulf %215, %191 : vector<2x64xf32>
    %226 = arith.addf %224, %225 : vector<2x64xf32>
    %227 = arith.index_cast %c5_i32 : i32 to index
    %c0_68 = arith.constant 0 : index
    %c0_69 = arith.constant 0 : index
    %228 = vector.load %arg16[%227, %c0_68, %c0_69] : memref<8x2x64xf32, #tpu.memory_space<vmem>>, vector<1x2x64xf32>
    %229 = vector.shape_cast %228 : vector<1x2x64xf32> to vector<2x64xf32>
    %230 = vector.shape_cast %226 : vector<2x64xf32> to vector<1x2x64xf32>
    tpu.vector_store %arg16[%227, %c0_68, %c0_69], %230 {strides = array<i32>} : memref<8x2x64xf32, #tpu.memory_space<vmem>>, vector<1x2x64xf32>,
    %c6_i32 = arith.constant 6 : i32
    %231 = arith.index_cast %c6_i32 : i32 to index
    %c0_70 = arith.constant 0 : index
    %c0_71 = arith.constant 0 : index
    %232 = vector.load %arg15[%231, %c0_70, %c0_71] : memref<8x2x192xf32, #tpu.memory_space<vmem>>, vector<1x2x192xf32>
    %233 = vector.shape_cast %232 : vector<1x2x192xf32> to vector<2x192xf32>
    %cst_72 = arith.constant dense<0.000000e+00> : vector<2x192xf32>
    %234 = tpu.matmul %226, %16, %cst_72 {dimension_numbers = #tpu.dot_dimension_numbers<[1], [0], [0], [1], [0, 0, 1, 1], [], []>} : vector<2x64xf32>, vector<64x192xf32>, vector<2x192xf32> -> vector<2x192xf32>
    %235 = vector.extract_strided_slice %233 {offsets = [0, 0], sizes = [2, 64], strides = [1, 1]} : vector<2x192xf32> to vector<2x64xf32>
    %236 = vector.extract_strided_slice %234 {offsets = [0, 0], sizes = [2, 64], strides = [1, 1]} : vector<2x192xf32> to vector<2x64xf32>
    %237 = arith.addf %235, %236 : vector<2x64xf32>
    %238 = arith.negf %237 : vector<2x64xf32>
    %239 = math.exp %238 : vector<2x64xf32>
    %cst_73 = arith.constant 1.000000e+00 : f32
    %240 = vector.broadcast %cst_73 : f32 to vector<2x64xf32>
    %241 = arith.addf %240, %239 : vector<2x64xf32>
    %242 = arith.divf %240, %241 : vector<2x64xf32>
    %243 = vector.extract_strided_slice %233 {offsets = [0, 64], sizes = [2, 64], strides = [1, 1]} : vector<2x192xf32> to vector<2x64xf32>
    %244 = vector.extract_strided_slice %234 {offsets = [0, 64], sizes = [2, 64], strides = [1, 1]} : vector<2x192xf32> to vector<2x64xf32>
    %245 = arith.addf %243, %244 : vector<2x64xf32>
    %246 = arith.negf %245 : vector<2x64xf32>
    %247 = math.exp %246 : vector<2x64xf32>
    %cst_74 = arith.constant 1.000000e+00 : f32
    %248 = vector.broadcast %cst_74 : f32 to vector<2x64xf32>
    %249 = arith.addf %248, %247 : vector<2x64xf32>
    %250 = arith.divf %248, %249 : vector<2x64xf32>
    %251 = vector.extract_strided_slice %233 {offsets = [0, 128], sizes = [2, 64], strides = [1, 1]} : vector<2x192xf32> to vector<2x64xf32>
    %252 = vector.extract_strided_slice %234 {offsets = [0, 128], sizes = [2, 64], strides = [1, 1]} : vector<2x192xf32> to vector<2x64xf32>
    %253 = arith.addf %252, %19 : vector<2x64xf32>
    %254 = arith.mulf %242, %253 : vector<2x64xf32>
    %255 = arith.addf %251, %254 : vector<2x64xf32>
    %256 = math.tanh %255 : vector<2x64xf32>
    %cst_75 = arith.constant 1.000000e+00 : f32
    %257 = vector.broadcast %cst_75 : f32 to vector<2x64xf32>
    %258 = arith.subf %257, %250 : vector<2x64xf32>
    %259 = arith.mulf %258, %256 : vector<2x64xf32>
    %260 = arith.mulf %250, %226 : vector<2x64xf32>
    %261 = arith.addf %259, %260 : vector<2x64xf32>
    %262 = arith.index_cast %c6_i32 : i32 to index
    %c0_76 = arith.constant 0 : index
    %c0_77 = arith.constant 0 : index
    %263 = vector.load %arg16[%262, %c0_76, %c0_77] : memref<8x2x64xf32, #tpu.memory_space<vmem>>, vector<1x2x64xf32>
    %264 = vector.shape_cast %263 : vector<1x2x64xf32> to vector<2x64xf32>
    %265 = vector.shape_cast %261 : vector<2x64xf32> to vector<1x2x64xf32>
    tpu.vector_store %arg16[%262, %c0_76, %c0_77], %265 {strides = array<i32>} : memref<8x2x64xf32, #tpu.memory_space<vmem>>, vector<1x2x64xf32>,
    %c7_i32 = arith.constant 7 : i32
    %266 = arith.index_cast %c7_i32 : i32 to index
    %c0_78 = arith.constant 0 : index
    %c0_79 = arith.constant 0 : index
    %267 = vector.load %arg15[%266, %c0_78, %c0_79] : memref<8x2x192xf32, #tpu.memory_space<vmem>>, vector<1x2x192xf32>
    %268 = vector.shape_cast %267 : vector<1x2x192xf32> to vector<2x192xf32>
    %cst_80 = arith.constant dense<0.000000e+00> : vector<2x192xf32>
    %269 = tpu.matmul %261, %16, %cst_80 {dimension_numbers = #tpu.dot_dimension_numbers<[1], [0], [0], [1], [0, 0, 1, 1], [], []>} : vector<2x64xf32>, vector<64x192xf32>, vector<2x192xf32> -> vector<2x192xf32>
    %270 = vector.extract_strided_slice %268 {offsets = [0, 0], sizes = [2, 64], strides = [1, 1]} : vector<2x192xf32> to vector<2x64xf32>
    %271 = vector.extract_strided_slice %269 {offsets = [0, 0], sizes = [2, 64], strides = [1, 1]} : vector<2x192xf32> to vector<2x64xf32>
    %272 = arith.addf %270, %271 : vector<2x64xf32>
    %273 = arith.negf %272 : vector<2x64xf32>
    %274 = math.exp %273 : vector<2x64xf32>
    %cst_81 = arith.constant 1.000000e+00 : f32
    %275 = vector.broadcast %cst_81 : f32 to vector<2x64xf32>
    %276 = arith.addf %275, %274 : vector<2x64xf32>
    %277 = arith.divf %275, %276 : vector<2x64xf32>
    %278 = vector.extract_strided_slice %268 {offsets = [0, 64], sizes = [2, 64], strides = [1, 1]} : vector<2x192xf32> to vector<2x64xf32>
    %279 = vector.extract_strided_slice %269 {offsets = [0, 64], sizes = [2, 64], strides = [1, 1]} : vector<2x192xf32> to vector<2x64xf32>
    %280 = arith.addf %278, %279 : vector<2x64xf32>
    %281 = arith.negf %280 : vector<2x64xf32>
    %282 = math.exp %281 : vector<2x64xf32>
    %cst_82 = arith.constant 1.000000e+00 : f32
    %283 = vector.broadcast %cst_82 : f32 to vector<2x64xf32>
    %284 = arith.addf %283, %282 : vector<2x64xf32>
    %285 = arith.divf %283, %284 : vector<2x64xf32>
    %286 = vector.extract_strided_slice %268 {offsets = [0, 128], sizes = [2, 64], strides = [1, 1]} : vector<2x192xf32> to vector<2x64xf32>
    %287 = vector.extract_strided_slice %269 {offsets = [0, 128], sizes = [2, 64], strides = [1, 1]} : vector<2x192xf32> to vector<2x64xf32>
    %288 = arith.addf %287, %19 : vector<2x64xf32>
    %289 = arith.mulf %277, %288 : vector<2x64xf32>
    %290 = arith.addf %286, %289 : vector<2x64xf32>
    %291 = math.tanh %290 : vector<2x64xf32>
    %cst_83 = arith.constant 1.000000e+00 : f32
    %292 = vector.broadcast %cst_83 : f32 to vector<2x64xf32>
    %293 = arith.subf %292, %285 : vector<2x64xf32>
    %294 = arith.mulf %293, %291 : vector<2x64xf32>
    %295 = arith.mulf %285, %261 : vector<2x64xf32>
    %296 = arith.addf %294, %295 : vector<2x64xf32>
    %297 = arith.index_cast %c7_i32 : i32 to index
    %c0_84 = arith.constant 0 : index
    %c0_85 = arith.constant 0 : index
    %298 = vector.load %arg16[%297, %c0_84, %c0_85] : memref<8x2x64xf32, #tpu.memory_space<vmem>>, vector<1x2x64xf32>
    %299 = vector.shape_cast %298 : vector<1x2x64xf32> to vector<2x64xf32>
    %300 = vector.shape_cast %296 : vector<2x64xf32> to vector<1x2x64xf32>
    tpu.vector_store %arg16[%297, %c0_84, %c0_85], %300 {strides = array<i32>} : memref<8x2x64xf32, #tpu.memory_space<vmem>>, vector<1x2x64xf32>,
    %c8_i32 = arith.constant 8 : i32
    %c0_86 = arith.constant 0 : index
    %c0_87 = arith.constant 0 : index
    %c0_88 = arith.constant 0 : index
    %301 = vector.load %arg16[%c0_86, %c0_87, %c0_88] : memref<8x2x64xf32, #tpu.memory_space<vmem>>, vector<8x2x64xf32>
    %302 = vector.shape_cast %301 : vector<8x2x64xf32> to vector<16x64xf32>
    %c0_89 = arith.constant 0 : index
    %c0_90 = arith.constant 0 : index
    %303 = vector.load %arg7[%c0_89, %c0_90] : memref<1x64xf32, #tpu.memory_space<vmem>>, vector<1x64xf32>
    %304 = vector.shape_cast %303 : vector<1x64xf32> to vector<1x1x64xf32>
    %305 = vector.broadcast %304 : vector<1x1x64xf32> to vector<8x2x64xf32>
    %306 = arith.mulf %301, %305 : vector<8x2x64xf32>
    %cst_91 = arith.constant dense<0.000000e+00> : vector<8x2xf32>
    %307 = vector.multi_reduction <add>, %306, %cst_91 [2] : vector<8x2x64xf32> to vector<8x2xf32>
    %308 = vector.shape_cast %307 : vector<8x2xf32> to vector<8x2x1xf32>
    %c0_92 = arith.constant 0 : index
    %c0_93 = arith.constant 0 : index
    %309 = vector.load %arg8[%c0_92, %c0_93] : memref<1x1xf32, #tpu.memory_space<vmem>>, vector<1x1xf32>
    %310 = vector.shape_cast %309 : vector<1x1xf32> to vector<1x1x1xf32>
    %311 = vector.broadcast %310 : vector<1x1x1xf32> to vector<8x2x1xf32>
    %312 = arith.addf %308, %311 : vector<8x2x1xf32>
    %cst_94 = arith.constant dense<0xFF800000> : vector<8x1xf32>
    %313 = vector.multi_reduction <maximumf>, %312, %cst_94 [1] : vector<8x2x1xf32> to vector<8x1xf32>
    %314 = vector.shape_cast %313 : vector<8x1xf32> to vector<8x1x1xf32>
    %315 = vector.broadcast %314 : vector<8x1x1xf32> to vector<8x2x1xf32>
    %316 = arith.subf %312, %315 : vector<8x2x1xf32>
    %317 = math.exp %316 : vector<8x2x1xf32>
    %cst_95 = arith.constant dense<0.000000e+00> : vector<8x1xf32>
    %318 = vector.multi_reduction <add>, %317, %cst_95 [1] : vector<8x2x1xf32> to vector<8x1xf32>
    %319 = vector.shape_cast %318 : vector<8x1xf32> to vector<8x1x1xf32>
    %320 = vector.broadcast %319 : vector<8x1x1xf32> to vector<8x2x1xf32>
    %321 = arith.divf %317, %320 : vector<8x2x1xf32>
    %c0_96 = arith.constant 0 : index
    %c0_97 = arith.constant 0 : index
    %322 = vector.load %arg9[%c0_96, %c0_97] : memref<64x32xf32, #tpu.memory_space<vmem>>, vector<64x32xf32>
    %cst_98 = arith.constant dense<0.000000e+00> : vector<16x32xf32>
    %323 = tpu.matmul %302, %322, %cst_98 {dimension_numbers = #tpu.dot_dimension_numbers<[1], [0], [0], [1], [0, 0, 1, 1], [], []>} : vector<16x64xf32>, vector<64x32xf32>, vector<16x32xf32> -> vector<16x32xf32>
    %c0_99 = arith.constant 0 : index
    %c0_100 = arith.constant 0 : index
    %324 = vector.load %arg10[%c0_99, %c0_100] : memref<1x32xf32, #tpu.memory_space<vmem>>, vector<1x32xf32>
    %325 = vector.broadcast %324 : vector<1x32xf32> to vector<16x32xf32>
    %326 = arith.addf %323, %325 : vector<16x32xf32>
    %327 = vector.shape_cast %326 : vector<16x32xf32> to vector<8x2x32xf32>
    %328 = math.tanh %327 : vector<8x2x32xf32>
    %329 = vector.broadcast %321 : vector<8x2x1xf32> to vector<8x2x32xf32>
    %330 = arith.mulf %329, %328 : vector<8x2x32xf32>
    %c0_101 = arith.constant 0 : index
    %c0_102 = arith.constant 0 : index
    %c0_103 = arith.constant 0 : index
    %331 = vector.load %arg14[%c0_101, %c0_102, %c0_103] : memref<8x2x32xf32, #tpu.memory_space<vmem>>, vector<8x2x32xf32>
    %332 = arith.mulf %330, %331 : vector<8x2x32xf32>
    %cst_104 = arith.constant dense<0.000000e+00> : vector<2x32xf32>
    %333 = vector.multi_reduction <add>, %332, %cst_104 [0] : vector<8x2x32xf32> to vector<2x32xf32>
    %c0_105 = arith.constant 0 : index
    %c0_106 = arith.constant 0 : index
    %334 = vector.load %arg11[%c0_105, %c0_106] : memref<1x32xf32, #tpu.memory_space<vmem>>, vector<1x32xf32>
    %335 = vector.broadcast %334 : vector<1x32xf32> to vector<2x32xf32>
    %336 = arith.mulf %333, %335 : vector<2x32xf32>
    %cst_107 = arith.constant dense<0.000000e+00> : vector<2xf32>
    %337 = vector.multi_reduction <add>, %336, %cst_107 [1] : vector<2x32xf32> to vector<2xf32>
    %338 = vector.shape_cast %337 : vector<2xf32> to vector<2x1xf32>
    %c0_108 = arith.constant 0 : index
    %c0_109 = arith.constant 0 : index
    %339 = vector.load %arg12[%c0_108, %c0_109] : memref<1x1xf32, #tpu.memory_space<vmem>>, vector<1x1xf32>
    %340 = vector.broadcast %339 : vector<1x1xf32> to vector<2x1xf32>
    %341 = arith.addf %338, %340 : vector<2x1xf32>
    %342 = arith.negf %341 : vector<2x1xf32>
    %343 = math.exp %342 : vector<2x1xf32>
    %cst_110 = arith.constant 1.000000e+00 : f32
    %344 = vector.broadcast %cst_110 : f32 to vector<2x1xf32>
    %345 = arith.addf %344, %343 : vector<2x1xf32>
    %346 = arith.divf %344, %345 : vector<2x1xf32>
    %cst_111 = arith.constant dense<0xFF800000> : vector<2xf32>
    %347 = vector.multi_reduction <maximumf>, %346, %cst_111 [1] : vector<2x1xf32> to vector<2xf32>
    %348 = vector.shape_cast %347 : vector<2xf32> to vector<2x1xf32>
    %349 = arith.subf %346, %348 : vector<2x1xf32>
    %350 = math.exp %349 : vector<2x1xf32>
    %cst_112 = arith.constant dense<0.000000e+00> : vector<2xf32>
    %351 = vector.multi_reduction <add>, %350, %cst_112 [1] : vector<2x1xf32> to vector<2xf32>
    %352 = vector.shape_cast %351 : vector<2xf32> to vector<2x1xf32>
    %353 = arith.divf %350, %352 : vector<2x1xf32>
    %c0_113 = arith.constant 0 : index
    %c0_114 = arith.constant 0 : index
    %354 = vector.load %arg13[%c0_113, %c0_114] : memref<2x1xf32, #tpu.memory_space<vmem>>, vector<2x1xf32>
    tpu.vector_store %arg13[%c0_113, %c0_114], %353 {strides = array<i32>} : memref<2x1xf32, #tpu.memory_space<vmem>>, vector<2x1xf32>,
    return
  }
}

</mosaic_0001>

<bundles_post_ra>
// kernel: tpu_custom_call.1
= control target key start
LH: loop header
LB: loop body
LE: loop exit
PB: predicated region body
PF: predicated region fallthrough
CT: control target
= control target key end

     0   :  { %s2667_s0 = inlined_call_operand.vmem [shape: f32[8,2,16], index: 0, kind: input, shape index: {}]   ;;  %s2668_s1 = inlined_call_operand.vmem [shape: f32[16,32], index: 1, kind: input, shape index: {}]   ;;  %s2669_s2 = inlined_call_operand.vmem [shape: f32[1,32], index: 2, kind: input, shape index: {}]   ;;  %s2670_s3 = inlined_call_operand.vmem [shape: f32[32,192], index: 3, kind: input, shape index: {}]   ;;  %s2671_s4 = inlined_call_operand.vmem [shape: f32[1,192], index: 4, kind: input, shape index: {}]   ;;  %s2672_s5 = inlined_call_operand.hbm [shape: f32[64,192], index: 5, kind: input, shape index: {}]   ;;  %s2673_s6 = inlined_call_operand.vmem [shape: f32[1,64], index: 6, kind: input, shape index: {}]   ;;  %s2674_s7 = inlined_call_operand.vmem [shape: f32[1,64], index: 7, kind: input, shape index: {}]   ;;  %s2675_s8 = inlined_call_operand.<no memory space> [shape: f32[1,1], index: 8, kind: input, shape index: {}]   ;;  %s2676_s9 = inlined_call_operand.vmem [shape: f32[64,32], index: 9, kind: input, shape index: {}]   ;;  %s2677_s10 = inlined_call_operand.vmem [shape: f32[1,32], index: 10, kind: input, shape index: {}]   ;;  %s2678_s11 = inlined_call_operand.vmem [shape: f32[1,32], index: 11, kind: input, shape index: {}]   ;;  %s2679_s13 = inlined_call_operand.vmem [shape: f32[2,1], index: 13, kind: output, shape index: {}]   ;;  %s2680_s12 = inlined_call_operand.<no memory space> [shape: f32[1,1], index: 12, kind: input, shape index: {}]  }
   0x1   :  { %v18_v0 = vstv %s2675_s8  ;;  %v20_v1 = vstv %s2680_s12 }
   0x2   :  { %19 = vst [vmem:[#allocation5] sm:$0x1] %v18_v0  ;;  %21 = vst [vmem:[#allocation6] sm:$0x1] %v20_v1 }
   0x3   :  { %22 = vsyncpa [#allocation8], 0  ;;  %s2200_s29 = smov [#allocation7]   ;;  %s2176_s16 = scalar_lea.hbm %s2672_s5, 2048 }
   0x4   :  { %s38_s30 = sshll.u32 %s2200_s29, 4  ;;  %p2177_p0 = scmp.ne.s32.totalorder %s2672_s5, %s2176_s16  ;;  %s39_s30 = int_to_ptr.vmem [resolvable:$true] %s38_s30 }
   0x5   :  { %p2180_p1 = scmp.lt.u32.totalorder %s2176_s16, %s2672_s5 }
   0x7   :  { %p2182_p2 = pnand %p2180_p1, %p2177_p0 }
   0x9   :  { %2185 = shalt.err (!%p2182_p2)
}
   0xa   :  { %s2186_s12 = scalar_lea.vmem %s39_s30, 2048  ;;  %p2191_p4 = scmp.lt.s32.totalorder %s39_s30, %s39_s30 }
   0xb   :  { %p2187_p3 = scmp.ne.s32.totalorder %s39_s30, %s2186_s12  ;;  %p2192_p5 = scmp.lt.s32.totalorder %s2186_s12, %s2186_s12 }
   0xd   :  { %p2193_p6 = por %p2192_p5, %p2191_p4 }
   0xf   :  { %p2194_p7 = pnand %p2193_p6, %p2187_p3 }
  0x11   :  { %2197 = shalt.err (!%p2194_p7)
}
  0x12   :  { %s2201_s20 = smov 256   ;;  %s2202_s21 = smov 16  }
  0x13   :  { %44 = dma.hbm_to_vmem [thread:$0]  %s2672_s5, 2048, %s39_s30, [#allocation8], %s2201_s20, %s2201_s20, %s2202_s21  }
  0x14   :  { %2198 = dma.done.wait [#allocation8], 2048  }
  0x15   :  { %2199 = vsyncadd [#allocation8], 4294965248  ;;  %v92_v2 = vlaneseq  ;;  %v2203_v3 = vmov 1983009808   ;;  %v70_v7 = vld [vmem:[%s2668_s1] sm:$0xff]  ;;  %v71_v8 = vld [vmem:[%s2668_s1 + $0x8] sm:$0xff] }
  0x16   :  { %v90_v4 = vunpack.c.l.s4 %v2203_v3  ;;  %v62_v9 = vld [vmem:[%s2667_s0] sm:$0x3]  ;;  %v1907_v11 = vpack.c.bf16 %v71_v8, %v70_v7  ;;  %v63_v12 = vld [vmem:[%s2667_s0 + $0x2] sm:$0x3]  ;;  %v64_v13 = vld [vmem:[%s2667_s0 + $0x4] sm:$0x3] }
  0x17   :  { %v2295_v6 = vshrl.u32 %v92_v2, 7  ;;  %v65_v14 = vld [vmem:[%s2667_s0 + $0x6] sm:$0x3]  ;;  %v87_v15 = vcombine.low %v62_v9, %v63_v12  ;;  %v66_v17 = vld [vmem:[%s2667_s0 + $0x8] sm:$0x3]  ;;  %v257_v23 = vld [vmem:[%s2670_s3 + $0x18] sm:$0xff] }
  0x18   :  { %v91_v5 = vunpack.c.0.s8 %v90_v4  ;;  %v88_v16 = vcombine.low %v64_v13, %v65_v14  ;;  %v67_v18 = vld [vmem:[%s2667_s0 + $0xa] sm:$0x3]  ;;  %v68_v19 = vld [vmem:[%s2667_s0 + $0xc] sm:$0x3]  ;;  %1908 = vmatprep.subr.bf16.mxu1 %v1907_v11  ;;  %v69_v20 = vld [vmem:[%s2667_s0 + $0xe] sm:$0x3] }
  0x19   :  { %v104_v21 = vcombine.low %v66_v17, %v67_v18  ;;  %v255_v22 = vld [vmem:[%s2670_s3 + $0x8] sm:$0xff]  ;;  %1910 = vmatpush3.bf16.msra.mxu1 %v1907_v11  ;;  %v105_v26 = vcombine.low %v68_v19, %v69_v20  ;;  %v254_v28 = vld [vmem:[%s2670_s3] sm:$0xff]  ;;  %v256_v29 = vld [vmem:[%s2670_s3 + $0x10] sm:$0xff]  ;;  %vm121_vm0 = vcmask 130048   ;;  %v2204_v47 = vmov 0.0   ;;  %s2205_s20 = smov 64  }
  0x1a   :  { %v2307_v10 = vsub.s32 %v91_v5, %v2295_v6  ;;  %v1911_v27 = vpack.c.bf16 %v257_v23, %v255_v22  ;;  %v1913_v33 = vpack.c.bf16 %v256_v29, %v254_v28  ;;  %v259_v35 = vld [vmem:[%s2670_s3 + $0x28] sm:$0xff]  ;;  %v261_v36 = vld [vmem:[%s2670_s3 + $0x38] sm:$0xff]  ;;  %v258_v38 = vld [vmem:[%s2670_s3 + $0x20] sm:$0xff]  ;;  %507 = vmatprep.mubr.f32.mxu0 %v2204_v47  ;;  %vm274_vm1 = vcmask 261120  }
  0x1b   :  { %v1915_v37 = vpack.c.bf16 %v261_v36, %v259_v35  ;;  %v260_v39 = vld [vmem:[%s2670_s3 + $0x30] sm:$0xff]  ;;  %v418_v42 = vld [vmem:[#allocation7 + $0x18] sm:$0xff]  ;;  %v415_v44 = vld [vmem:[#allocation7] sm:$0xff]  ;;  %vm245_vm2 = vcmask 254976   ;;  %v270_v23 = vsub.s32 1, %v2295_v6  ;;  %vm404_vm3 = vcmask 1041408  }
  0x1c   :  { %v95_v24 = vrot.slane %v87_v15, %v2307_v10  ;;  %v102_v25 = vrot.slane %v88_v16, %v2307_v10  ;;  %v112_v30 = vrot.slane %v104_v21, %v2307_v10  ;;  %v119_v32 = vrot.slane %v105_v26, %v2307_v10  ;;  %1912 = vmatprep.subr.bf16.mxu1 %v1911_v27  ;;  %v416_v41 = vld [vmem:[#allocation7 + $0x8] sm:$0xff]  ;;  %v417_v45 = vld [vmem:[#allocation7 + $0x10] sm:$0xff]  ;;  %v422_v49 = vld [vmem:[#allocation7 + $0x38] sm:$0xff] }
  0x1d   :  { %v1917_v40 = vpack.c.bf16 %v260_v39, %v258_v38  ;;  %v2358_v43 = vpack.c.bf16 %v418_v42, %v416_v41  ;;  %v2360_v46 = vpack.c.bf16 %v417_v45, %v415_v44  ;;  %v420_v48 = vld [vmem:[#allocation7 + $0x28] sm:$0xff]  ;;  %v419_v51 = vld [vmem:[#allocation7 + $0x20] sm:$0xff]  ;;  %v421_v52 = vld [vmem:[#allocation7 + $0x30] sm:$0xff]  ;;  %v266_v21 = vsub.s32 0, %v2295_v6 }
  0x1e   :  { %v103_v31 = vcombine.low %v95_v24, %v102_v25  ;;  %v120_v34 = vcombine.low %v112_v30, %v119_v32  ;;  %v2366_v50 = vpack.c.bf16 %v422_v49, %v420_v48  ;;  %v2369_v53 = vpack.c.bf16 %v421_v52, %v419_v51  ;;  %v424_v54 = vld [vmem:[#allocation7 + $0x48] sm:$0xff]  ;;  %v426_v55 = vld [vmem:[#allocation7 + $0x58] sm:$0xff]  ;;  %v423_v57 = vld [vmem:[#allocation7 + $0x40] sm:$0xff] }
  0x1f   :  { %1920 = vmatprep.subr.bf16.mxu0 %v2358_v43  ;;  %v2373_v56 = vpack.c.bf16 %v426_v55, %v424_v54  ;;  %v425_v58 = vld [vmem:[#allocation7 + $0x50] sm:$0xff]  ;;  %v428_v60 = vld [vmem:[#allocation7 + $0x68] sm:$0xff]  ;;  %v430_v61 = vld [vmem:[#allocation7 + $0x78] sm:$0xff]  ;;  %vm405_vm4 = vcmask 519170   ;;  %vm547_vm6 = vcmask 517120   ;;  %vm439_vm7 = vcmask 523264  }
  0x20   :  { %1885 = vmatprep.mubr.msk.f32.mxu1 %vm121_vm0, %v103_v31  ;;  %1922 = vmatpush1.bf16.msra.mxu0 %v2360_v46  ;;  %v2375_v59 = vpack.c.bf16 %v425_v58, %v423_v57  ;;  %v427_v62 = vld [vmem:[#allocation7 + $0x60] sm:$0xff]  ;;  %v2379_v63 = vpack.c.bf16 %v430_v61, %v428_v60  ;;  %v429_v0 = vld [vmem:[#allocation7 + $0x70] sm:$0xff]  ;;  %v1838_v2 = vld [vmem:[%s2669_s2] ss:$0 sm:$0xff]  ;;  %vm1381_vm8 = vcmask 1024  }
  0x21   :  { %1886 = vmatmul.mubr.msk.f32.vlgmr.msra.gmra.mrb[0].mxu1 %vm121_vm0, %v120_v34  ;;  %1924 = vmatprep.subr.bf16.mxu0 %v2366_v50  ;;  %v2381_v1 = vpack.c.bf16 %v429_v0, %v427_v62  ;;  %v262_v22 = vld [vmem:[%s2671_s4] sm:$0x3]  ;;  %vm2428_vm5 = vmor %vm405_vm4, %vm404_vm3 }
  0x22   :  { %1914 = vmatpush1.bf16.msra.mxu1 %v1913_v33  ;;  %343 = vmatprep.mubr.f32.mxu1 %v2204_v47  ;;  %v267_v24 = vrot.slane %v262_v22, %v266_v21  ;;  %v271_v25 = vrot.slane %v262_v22, %v270_v23  ;;  %v2455_v57 = vld [vmem:[%s2673_s6] ss:$0 sm:$0xff] }
  0x23   :  { %1916 = vmatprep.subr.bf16.mxu1 %v1915_v37 }
  0x24   :  { %1926 = vmatpush1.bf16.msra.mxu0 %v2369_v53 }
  0x25   :  { %1928 = vmatprep.subr.bf16.mxu0 %v2373_v56 }
  0x26   :  { %1918 = vmatpush1.bf16.msra.mxu1 %v1917_v40 }
  0x27   :  { %1936 = vmatprep.subr.bf16.mxu1 %v2358_v43 }
  0x28   :  { %1930 = vmatpush1.bf16.msra.mxu0 %v2375_v59 }
  0x29   :  { %1932 = vmatprep.subr.bf16.mxu0 %v2379_v63 }
  0x2c   :  { %1934 = vmatpush1.bf16.msra.mxu0 %v2381_v1 }
  0x2d   :  { %1952 = vmatprep.subr.bf16.mxu0 %v2358_v43 }
  0x2f   :  { %508 = vmatmul.mubr.f32.vlgmr.msra.gmra.mrb[0].mxu0 %v2204_v47 }
  0x30   :  { %1954 = vmatpush1.bf16.msra.mxu0 %v2360_v46  ;;  %727 = vmatprep.mubr.f32.mxu0 %v2204_v47 }
  0x31   :  { %1956 = vmatprep.subr.bf16.mxu0 %v2366_v50 }
  0x34   :  { %1958 = vmatpush1.bf16.msra.mxu0 %v2369_v53 }
  0x35   :  { %1960 = vmatprep.subr.bf16.mxu0 %v2373_v56 }
  0x38   :  { %1962 = vmatpush1.bf16.msra.mxu0 %v2375_v59 }
  0x39   :  { %1964 = vmatprep.subr.bf16.mxu0 %v2379_v63 }
  0x3c   :  { %1966 = vmatpush1.bf16.msra.mxu0 %v2381_v1 }
  0x3d   :  { %1984 = vmatprep.subr.bf16.mxu0 %v2358_v43 }
  0xf4   :  { %v1887_v3 = vpop.f32.mrb[0].mxu1 }
  0xf5   :  { %v198_v4 = vadd.f32 %v1887_v3, %v1838_v2  ;;  %v192_v5 = vpop.f32.mrb[1].mxu1 }
  0xf6   :  { %v193_v7 = vadd.f32 %v1838_v2, %v192_v5 }
  0xf7   :  { %v220_v8 = vcombine.high %v198_v4, %v198_v4  ;;  %v227_v9 = vrot.slane %v198_v4, %v2307_v10 }
  0xf8   :  { %v203_v11 = vcombine.high %v193_v7, %v193_v7  ;;  %v210_v12 = vrot.slane %v193_v7, %v2307_v10  ;;  %1841 = vmatmul.mubr.msk.f32.vlgmr.msra.gmra.mrb[2].mxu1 %vm274_vm1, %v193_v7 }
  0xf9   :  { %v234_v13 = vrot.slane %v220_v8, %v2307_v10  ;;  %v235_v14 = vcombine.high %v227_v9, %v227_v9  ;;  %250 = vst.msk [vmem:[#allocation2 + $0x8] sm:$0x3] %vm245_vm2, %v227_v9  ;;  %349 = vmatprep.mubr.f32.mxu1 %v2204_v47  ;;  %1938 = vmatpush1.bf16.msra.mxu1 %v2360_v46 }
  0xfa   :  { %v217_v15 = vrot.slane %v203_v11, %v2307_v10  ;;  %v218_v16 = vcombine.high %v210_v12, %v210_v12  ;;  %246 = vst.msk [vmem:[#allocation2] sm:$0x3] %vm245_vm2, %v210_v12  ;;  %1940 = vmatprep.subr.bf16.mxu1 %v2366_v50 }
  0xfb   :  { %v236_v17 = vcombine.high %v234_v13, %v234_v13  ;;  %251 = vst.msk [vmem:[#allocation2 + $0xa] sm:$0x3] %vm245_vm2, %v235_v14  ;;  %252 = vst.msk [vmem:[#allocation2 + $0xc] sm:$0x3] %vm245_vm2, %v234_v13 }
  0xfc   :  { %v219_v18 = vcombine.high %v217_v15, %v217_v15  ;;  %247 = vst.msk [vmem:[#allocation2 + $0x2] sm:$0x3] %vm245_vm2, %v218_v16  ;;  %248 = vst.msk [vmem:[#allocation2 + $0x4] sm:$0x3] %vm245_vm2, %v217_v15  ;;  %1842 = vmatmul.mubr.msk.f32.gmra.mrb[4].mxu1 %vm274_vm1, %v198_v4 }
  0xfd   :  { %253 = vst.msk [vmem:[#allocation2 + $0xe] sm:$0x3] %vm245_vm2, %v236_v17  ;;  %1942 = vmatpush1.bf16.msra.mxu1 %v2369_v53  ;;  %617 = vmatprep.mubr.f32.mxu1 %v2204_v47 }
  0xfe   :  { %249 = vst.msk [vmem:[#allocation2 + $0x6] sm:$0x3] %vm245_vm2, %v219_v18  ;;  %1944 = vmatprep.subr.bf16.mxu1 %v2373_v56 }
 0x101   :  { %1946 = vmatpush1.bf16.msra.mxu1 %v2375_v59 }
 0x102   :  { %1948 = vmatprep.subr.bf16.mxu1 %v2379_v63  ;;  %v509_v19 = vpop.f32.mrb[0].mxu0 }
 0x103   :  { %v511_v20 = vpop.f32.mrb[1].mxu0 }
 0x104   :  { %v521_v58 = vadd.f32 %v2455_v57, %v511_v20 }
 0x105   :  { %1950 = vmatpush1.bf16.msra.mxu1 %v2381_v1 }
 0x106   :  { %1968 = vmatprep.subr.bf16.mxu1 %v2358_v43 }
 0x1cb   :  { %v345_v26 = vpop.f32.mrb[2].mxu1 }
 0x1cc   :  { %v346_v27 = vadd.f32 %v345_v26, %v267_v24  ;;  %v347_v28 = vpop.f32.mrb[3].mxu1 }
 0x1cd   :  { %v348_v29 = vadd.f32 %v347_v28, %v271_v25 }
 0x1cf   :  { %v360_v30 = vcombine.low %v346_v27, %v348_v29  ;;  %v361_v31 = vcombine.high %v346_v27, %v348_v29  ;;  %v351_v32 = vpop.f32.mrb[4].mxu1 }
 0x1d0   :  { %v352_v34 = vadd.f32 %v351_v32, %v267_v24  ;;  %v353_v35 = vpop.f32.mrb[5].mxu1 }
 0x1d1   :  { %v368_v36 = vrot.slane %v360_v30, %v2307_v10  ;;  %v375_v6 = vrot.slane %v361_v31, %v2307_v10  ;;  %v354_v37 = vadd.f32 %v353_v35, %v271_v25 }
 0x1d3   :  { %v376_v38 = vcombine.high %v368_v36, %v368_v36  ;;  %v377_v39 = vcombine.high %v375_v6, %v375_v6  ;;  %407 = vst.msk [vmem:[#allocation3] sm:$0xf] %vm2428_vm5, %v368_v36  ;;  %409 = vst.msk [vmem:[#allocation3 + $0x8] sm:$0xf] %vm2428_vm5, %v375_v6  ;;  %v378_v40 = vcombine.low %v352_v34, %v354_v37 }
 0x1d4   :  { %v379_v41 = vcombine.high %v352_v34, %v354_v37 }
 0x1d5   :  { %408 = vst.msk [vmem:[#allocation3 + $0x4] sm:$0xf] %vm2428_vm5, %v376_v38  ;;  %410 = vst.msk [vmem:[#allocation3 + $0xc] sm:$0xf] %vm2428_vm5, %v377_v39  ;;  %v386_v42 = vrot.slane %v378_v40, %v2307_v10 }
 0x1d6   :  { %v393_v44 = vrot.slane %v379_v41, %v2307_v10 }
 0x1d7   :  { %v394_v45 = vcombine.high %v386_v42, %v386_v42  ;;  %411 = vst.msk [vmem:[#allocation3 + $0x10] sm:$0xf] %vm2428_vm5, %v386_v42 }
 0x1d8   :  { %v395_v48 = vcombine.high %v393_v44, %v393_v44  ;;  %413 = vst.msk [vmem:[#allocation3 + $0x18] sm:$0xf] %vm2428_vm5, %v393_v44 }
 0x1d9   :  { %412 = vst.msk [vmem:[#allocation3 + $0x14] sm:$0xf] %vm2428_vm5, %v394_v45 }
 0x1da   :  { %414 = vst.msk [vmem:[#allocation3 + $0x1c] sm:$0xf] %vm2428_vm5, %v395_v48  ;;  %v438_v49 = vld [vmem:[#allocation3] sm:$0xf]  ;;  %v660_v32 = vld [vmem:[#allocation3 + $0x8] sm:$0xf] }
 0x1db   :  { %v514_v51 = vadd.f32 %v509_v19, %v438_v49  ;;  %v524_v61 = vrot.slane %v438_v49, 2  ;;  %v744_v40 = vrot.slane %v660_v32, 2 }
 0x1dc   :  { %v550_v12 = vld [vmem:[#allocation3 + $0x4] sm:$0xf] }
 0x1dd   :  { %v1844_v52 = vmul.f32 -1.442695, %v514_v51  ;;  %v634_v21 = vrot.slane %v550_v12, 2 }
 0x1df   :  { %2072 = vpow2.f32 %v1844_v52 }
 0x1e9   :  { %v2073_v54 = vpop.eup %2072 }
 0x1ea   :  { %v518_v55 = vadd.f32 1.0, %v2073_v54 }
 0x1ec   :  { %2074 = vrcp.f32 %v518_v55 }
 0x1f6   :  { %v2075_v60 = vpop.eup %2074 }
 0x1f7   :  { %v522_v62 = vmul.f32 %v2075_v60, %v521_v58  ;;  %v528_v3 = vsub.f32 1.0, %v2075_v60  ;;  %v534_v5 = vmul.f32 0.0, %v2075_v60  ;;  %v770_v58 = vld [vmem:[#allocation3 + $0xc] sm:$0xf] }
 0x1f9   :  { %v526_v0 = vadd.f32 %v524_v61, %v522_v62 }
 0x1fb   :  { %2076 = vtanh.f32 %v526_v0 }
 0x205   :  { %v2077_v2 = vpop.eup %2076 }
 0x206   :  { %530 = vrot.lane.b32.xlu0 %v2077_v2, %s2205_s20 }
 0x278   :  { %v531_v4 = vpop.permute.xlu0 %530 }
 0x279   :  { %v533_v7 = vmul.f32 %v531_v4, %v528_v3 }
 0x27b   :  { %v535_v8 = vadd.f32 %v534_v5, %v533_v7  ;;  %v854_v7 = vrot.slane %v770_v58, 2 }
 0x27d   :  { %v543_v9 = vrot.slane %v535_v8, %v2307_v10 }
 0x27f   :  { %544 = vrot.lane.b32.xlu0 %v543_v9, %s2205_s20 }
 0x2f1   :  { %v545_v11 = vpop.permute.xlu0 %544 }
 0x2f2   :  { %548 = vst.msk [vmem:[#allocation4] sm:$0x3] %vm547_vm6, %v545_v11  ;;  %1845 = vmatmul.mubr.msk.f32.vlgmr.msra.gmra.mrb[6].mxu1 %vm439_vm7, %v545_v11 }
 0x2f3   :  { %1970 = vmatpush1.bf16.msra.mxu1 %v2360_v46  ;;  %837 = vmatprep.mubr.f32.mxu1 %v2204_v47 }
 0x2f4   :  { %1972 = vmatprep.subr.bf16.mxu1 %v2366_v50 }
 0x2f7   :  { %1974 = vmatpush1.bf16.msra.mxu1 %v2369_v53 }
 0x2f8   :  { %1976 = vmatprep.subr.bf16.mxu1 %v2373_v56 }
 0x2fb   :  { %1978 = vmatpush1.bf16.msra.mxu1 %v2375_v59 }
 0x2fc   :  { %1980 = vmatprep.subr.bf16.mxu1 %v2379_v63 }
 0x2ff   :  { %1982 = vmatpush1.bf16.msra.mxu1 %v2381_v1 }
 0x300   :  { %2000 = vmatprep.subr.bf16.mxu1 %v2358_v43 }
 0x3c5   :  { %v619_v13 = vpop.f32.mrb[6].mxu1 }
 0x3c6   :  { %v624_v14 = vadd.f32 %v619_v13, %v550_v12  ;;  %v621_v15 = vpop.f32.mrb[7].mxu1 }
 0x3c7   :  { %v631_v19 = vadd.f32 %v2455_v57, %v621_v15 }
 0x3c8   :  { %v1846_v16 = vmul.f32 -1.442695, %v624_v14 }
 0x3ca   :  { %2078 = vpow2.f32 %v1846_v16 }
 0x3d4   :  { %v2079_v17 = vpop.eup %2078 }
 0x3d5   :  { %v628_v18 = vadd.f32 1.0, %v2079_v17 }
 0x3d7   :  { %2080 = vrcp.f32 %v628_v18  ;;  %v880_v18 = vld [vmem:[#allocation3 + $0x10] sm:$0xf] }
 0x3e1   :  { %v2081_v20 = vpop.eup %2080 }
 0x3e2   :  { %v632_v22 = vmul.f32 %v2081_v20, %v631_v19  ;;  %v638_v25 = vsub.f32 1.0, %v2081_v20  ;;  %v644_v27 = vmul.f32 %v2081_v20, %v535_v8 }
 0x3e4   :  { %v636_v23 = vadd.f32 %v634_v21, %v632_v22 }
 0x3e6   :  { %2082 = vtanh.f32 %v636_v23 }
 0x3f0   :  { %v2083_v24 = vpop.eup %2082 }
 0x3f1   :  { %640 = vrot.lane.b32.xlu1 %v2083_v24, %s2205_s20 }
 0x463   :  { %v641_v26 = vpop.permute.xlu1 %640 }
 0x464   :  { %v643_v28 = vmul.f32 %v641_v26, %v638_v25 }
 0x466   :  { %v645_v29 = vadd.f32 %v644_v27, %v643_v28  ;;  %v964_v27 = vrot.slane %v880_v18, 2 }
 0x468   :  { %v653_v30 = vrot.slane %v645_v29, %v2307_v10 }
 0x46a   :  { %654 = vrot.lane.b32.xlu1 %v653_v30, %s2205_s20 }
 0x4dc   :  { %v655_v31 = vpop.permute.xlu1 %654 }
 0x4dd   :  { %658 = vst.msk [vmem:[#allocation4 + $0x2] sm:$0x3] %vm547_vm6, %v655_v31  ;;  %1847 = vmatmul.mubr.msk.f32.vlgmr.msra.gmra.mrb[2].mxu0 %vm439_vm7, %v655_v31 }
 0x4de   :  { %1986 = vmatpush1.bf16.msra.mxu0 %v2360_v46  ;;  %947 = vmatprep.mubr.f32.mxu0 %v2204_v47 }
 0x4df   :  { %1988 = vmatprep.subr.bf16.mxu0 %v2366_v50 }
 0x4e2   :  { %1990 = vmatpush1.bf16.msra.mxu0 %v2369_v53 }
 0x4e3   :  { %1992 = vmatprep.subr.bf16.mxu0 %v2373_v56 }
 0x4e6   :  { %1994 = vmatpush1.bf16.msra.mxu0 %v2375_v59 }
 0x4e7   :  { %1996 = vmatprep.subr.bf16.mxu0 %v2379_v63 }
 0x4ea   :  { %1998 = vmatpush1.bf16.msra.mxu0 %v2381_v1 }
 0x4eb   :  { %2016 = vmatprep.subr.bf16.mxu0 %v2358_v43 }
 0x5b0   :  { %v729_v33 = vpop.f32.mrb[2].mxu0 }
 0x5b1   :  { %v734_v34 = vadd.f32 %v729_v33, %v660_v32  ;;  %v731_v35 = vpop.f32.mrb[3].mxu0 }
 0x5b2   :  { %v741_v38 = vadd.f32 %v2455_v57, %v731_v35 }
 0x5b3   :  { %v1848_v36 = vmul.f32 -1.442695, %v734_v34 }
 0x5b5   :  { %2084 = vpow2.f32 %v1848_v36 }
 0x5bf   :  { %v2085_v6 = vpop.eup %2084 }
 0x5c0   :  { %v738_v37 = vadd.f32 1.0, %v2085_v6 }
 0x5c2   :  { %2086 = vrcp.f32 %v738_v37  ;;  %v990_v37 = vld [vmem:[#allocation3 + $0x14] sm:$0xf] }
 0x5cc   :  { %v2087_v39 = vpop.eup %2086 }
 0x5cd   :  { %v742_v41 = vmul.f32 %v2087_v39, %v741_v38  ;;  %v748_v45 = vsub.f32 1.0, %v2087_v39  ;;  %v754_v49 = vmul.f32 %v2087_v39, %v645_v29 }
 0x5cf   :  { %v746_v42 = vadd.f32 %v744_v40, %v742_v41 }
 0x5d1   :  { %2088 = vtanh.f32 %v746_v42  ;;  %v1074_v42 = vrot.slane %v990_v37, 2 }
 0x5db   :  { %v2089_v44 = vpop.eup %2088 }
 0x5dc   :  { %750 = vrot.lane.b32.xlu0 %v2089_v44, %s2205_s20 }
 0x64e   :  { %v751_v48 = vpop.permute.xlu0 %750 }
 0x64f   :  { %v753_v51 = vmul.f32 %v751_v48, %v748_v45 }
 0x651   :  { %v755_v52 = vadd.f32 %v754_v49, %v753_v51 }
 0x653   :  { %v763_v54 = vrot.slane %v755_v52, %v2307_v10 }
 0x655   :  { %764 = vrot.lane.b32.xlu1 %v763_v54, %s2205_s20  ;;  %v2536_v54 = vld [vmem:[#allocation4 + $0x2] sm:$0x3] }
 0x6c7   :  { %v765_v55 = vpop.permute.xlu1 %764 }
 0x6c8   :  { %768 = vst.msk [vmem:[#allocation4 + $0x4] sm:$0x3] %vm547_vm6, %v765_v55  ;;  %1849 = vmatmul.mubr.msk.f32.vlgmr.msra.gmra.mrb[8].mxu1 %vm439_vm7, %v765_v55 }
 0x6c9   :  { %2002 = vmatpush1.bf16.msra.mxu1 %v2360_v46  ;;  %1057 = vmatprep.mubr.f32.mxu1 %v2204_v47 }
 0x6ca   :  { %2004 = vmatprep.subr.bf16.mxu1 %v2366_v50 }
 0x6cd   :  { %2006 = vmatpush1.bf16.msra.mxu1 %v2369_v53 }
 0x6ce   :  { %2008 = vmatprep.subr.bf16.mxu1 %v2373_v56 }
 0x6cf   :  { %v1321_v55 = vld [vmem:[#allocation4 + $0x4] sm:$0x3] }
 0x6d1   :  { %2010 = vmatpush1.bf16.msra.mxu1 %v2375_v59 }
 0x6d2   :  { %2012 = vmatprep.subr.bf16.mxu1 %v2379_v63 }
 0x6d5   :  { %2014 = vmatpush1.bf16.msra.mxu1 %v2381_v1 }
 0x6d6   :  { %2032 = vmatprep.subr.bf16.mxu1 %v2358_v43 }
 0x79b   :  { %v839_v60 = vpop.f32.mrb[8].mxu1 }
 0x79c   :  { %v844_v61 = vadd.f32 %v839_v60, %v770_v58  ;;  %v841_v62 = vpop.f32.mrb[9].mxu1  ;;  %v1319_v60 = vld [vmem:[#allocation4] sm:$0x3] }
 0x79d   :  { %v851_v4 = vadd.f32 %v2455_v57, %v841_v62 }
 0x79e   :  { %v1850_v0 = vmul.f32 -1.442695, %v844_v61  ;;  %v1557_v61 = vcombine.low %v1319_v60, %v2536_v54 }
 0x7a0   :  { %2090 = vpow2.f32 %v1850_v0  ;;  %v1565_v0 = vrot.slane %v1557_v61, %v2307_v10 }
 0x7aa   :  { %v2091_v2 = vpop.eup %2090 }
 0x7ab   :  { %v848_v3 = vadd.f32 1.0, %v2091_v2 }
 0x7ad   :  { %2092 = vrcp.f32 %v848_v3 }
 0x7b7   :  { %v2093_v5 = vpop.eup %2092 }
 0x7b8   :  { %v852_v8 = vmul.f32 %v2093_v5, %v851_v4  ;;  %v858_v43 = vsub.f32 1.0, %v2093_v5  ;;  %v864_v13 = vmul.f32 %v2093_v5, %v755_v52  ;;  %v1100_v4 = vld [vmem:[#allocation3 + $0x18] sm:$0xf] }
 0x7ba   :  { %v856_v9 = vadd.f32 %v854_v7, %v852_v8 }
 0x7bc   :  { %2094 = vtanh.f32 %v856_v9 }
 0x7c6   :  { %v2095_v11 = vpop.eup %2094 }
 0x7c7   :  { %860 = vrot.lane.b32.xlu0 %v2095_v11, %s2205_s20 }
 0x839   :  { %v861_v12 = vpop.permute.xlu0 %860 }
 0x83a   :  { %v863_v14 = vmul.f32 %v861_v12, %v858_v43 }
 0x83c   :  { %v865_v15 = vadd.f32 %v864_v13, %v863_v14  ;;  %v1184_v14 = vrot.slane %v1100_v4, 2 }
 0x83e   :  { %v873_v16 = vrot.slane %v865_v15, %v2307_v10 }
 0x840   :  { %874 = vrot.lane.b32.xlu1 %v873_v16, %s2205_s20 }
 0x8b2   :  { %v875_v17 = vpop.permute.xlu1 %874 }
 0x8b3   :  { %878 = vst.msk [vmem:[#allocation4 + $0x6] sm:$0x3] %vm547_vm6, %v875_v17  ;;  %1851 = vmatmul.mubr.msk.f32.vlgmr.msra.gmra.mrb[4].mxu0 %vm439_vm7, %v875_v17 }
 0x8b4   :  { %2018 = vmatpush1.bf16.msra.mxu0 %v2360_v46  ;;  %1167 = vmatprep.mubr.f32.mxu0 %v2204_v47 }
 0x8b5   :  { %2020 = vmatprep.subr.bf16.mxu0 %v2366_v50 }
 0x8b8   :  { %2022 = vmatpush1.bf16.msra.mxu0 %v2369_v53 }
 0x8b9   :  { %2024 = vmatprep.subr.bf16.mxu0 %v2373_v56 }
 0x8ba   :  { %v2534_v52 = vld [vmem:[#allocation4 + $0x6] sm:$0x3] }
 0x8bb   :  { %v1558_v58 = vcombine.low %v1321_v55, %v2534_v52 }
 0x8bc   :  { %2026 = vmatpush1.bf16.msra.mxu0 %v2375_v59 }
 0x8bd   :  { %2028 = vmatprep.subr.bf16.mxu0 %v2379_v63  ;;  %v1572_v62 = vrot.slane %v1558_v58, %v2307_v10 }
 0x8bf   :  { %v1573_v3 = vcombine.low %v1565_v0, %v1572_v62 }
 0x8c0   :  { %2030 = vmatpush1.bf16.msra.mxu0 %v2381_v1 }
 0x986   :  { %v949_v19 = vpop.f32.mrb[4].mxu0 }
 0x987   :  { %v954_v20 = vadd.f32 %v949_v19, %v880_v18  ;;  %v951_v21 = vpop.f32.mrb[5].mxu0 }
 0x988   :  { %v961_v25 = vadd.f32 %v2455_v57, %v951_v21 }
 0x989   :  { %v1852_v22 = vmul.f32 -1.442695, %v954_v20 }
 0x98b   :  { %2096 = vpow2.f32 %v1852_v22 }
 0x995   :  { %v2097_v23 = vpop.eup %2096 }
 0x996   :  { %v958_v24 = vadd.f32 1.0, %v2097_v23 }
 0x998   :  { %2098 = vrcp.f32 %v958_v24 }
 0x9a2   :  { %v2099_v26 = vpop.eup %2098 }
 0x9a3   :  { %v962_v28 = vmul.f32 %v2099_v26, %v961_v25  ;;  %v968_v31 = vsub.f32 1.0, %v2099_v26  ;;  %v974_v33 = vmul.f32 %v2099_v26, %v865_v15  ;;  %v1210_v25 = vld [vmem:[#allocation3 + $0x1c] sm:$0xf] }
 0x9a5   :  { %v966_v29 = vadd.f32 %v964_v27, %v962_v28 }
 0x9a7   :  { %2100 = vtanh.f32 %v966_v29 }
 0x9b1   :  { %v2101_v30 = vpop.eup %2100 }
 0x9b2   :  { %970 = vrot.lane.b32.xlu0 %v2101_v30, %s2205_s20 }
 0xa24   :  { %v971_v32 = vpop.permute.xlu0 %970 }
 0xa25   :  { %v973_v34 = vmul.f32 %v971_v32, %v968_v31 }
 0xa27   :  { %v975_v35 = vadd.f32 %v974_v33, %v973_v34  ;;  %v1294_v34 = vrot.slane %v1210_v25, 2 }
 0xa29   :  { %v983_v36 = vrot.slane %v975_v35, %v2307_v10 }
 0xa2b   :  { %984 = vrot.lane.b32.xlu1 %v983_v36, %s2205_s20 }
 0xa9d   :  { %v985_v6 = vpop.permute.xlu1 %984 }
 0xa9e   :  { %988 = vst.msk [vmem:[#allocation4 + $0x8] sm:$0x3] %vm547_vm6, %v985_v6  ;;  %1853 = vmatmul.mubr.msk.f32.vlgmr.msra.gmra.mrb[10].mxu1 %vm439_vm7, %v985_v6 }
 0xa9f   :  { %2034 = vmatpush1.bf16.msra.mxu1 %v2360_v46  ;;  %1277 = vmatprep.mubr.f32.mxu1 %v2204_v47 }
 0xaa0   :  { %2036 = vmatprep.subr.bf16.mxu1 %v2366_v50 }
 0xaa3   :  { %2038 = vmatpush1.bf16.msra.mxu1 %v2369_v53 }
 0xaa4   :  { %2040 = vmatprep.subr.bf16.mxu1 %v2373_v56 }
 0xaa7   :  { %2042 = vmatpush1.bf16.msra.mxu1 %v2375_v59 }
 0xaa8   :  { %2044 = vmatprep.subr.bf16.mxu1 %v2379_v63 }
 0xaab   :  { %2046 = vmatpush1.bf16.msra.mxu1 %v2381_v1 }
 0xb71   :  { %v1059_v38 = vpop.f32.mrb[10].mxu1 }
 0xb72   :  { %v1064_v39 = vadd.f32 %v1059_v38, %v990_v37  ;;  %v1061_v40 = vpop.f32.mrb[11].mxu1  ;;  %v2556_v37 = vld [vmem:[%s2674_s7] ss:$0 sm:$0xff] }
 0xb73   :  { %v1071_v50 = vadd.f32 %v2455_v57, %v1061_v40  ;;  %v1334_v38 = vmul.f32 %v2556_v37, %v1319_v60  ;;  %v1336_v40 = vmul.f32 %v2556_v37, %v1321_v55  ;;  %v1541_v55 = vld [vmem:[%s2676_s9 + $0x38] sm:$0xff] }
 0xb74   :  { %v1854_v41 = vmul.f32 -1.442695, %v1064_v39 }
 0xb75   :  { %v1342_v39 = vsel %vm547_vm6, %v1334_v38, 0.0 }
 0xb76   :  { %2102 = vpow2.f32 %v1854_v41  ;;  %v1337_v41 = vmul.f32 %v2556_v37, %v2534_v52 }
 0xb80   :  { %v2103_v46 = vpop.eup %2102 }
 0xb81   :  { %v1068_v47 = vadd.f32 1.0, %v2103_v46 }
 0xb83   :  { %2104 = vrcp.f32 %v1068_v47  ;;  %v1351_v47 = vsel %vm547_vm6, %v1337_v41, 0.0 }
 0xb8d   :  { %v2105_v53 = vpop.eup %2104 }
 0xb8e   :  { %v1072_v56 = vmul.f32 %v2105_v53, %v1071_v50  ;;  %v1078_v63 = vsub.f32 1.0, %v2105_v53  ;;  %v1084_v45 = vmul.f32 %v2105_v53, %v975_v35 }
 0xb90   :  { %v1076_v44 = vadd.f32 %v1074_v42, %v1072_v56  ;;  %v2206_v42 = vmov 0   ;;  %v1534_v56 = vld [vmem:[%s2676_s9] sm:$0xff] }
 0xb91   :  { %2070 = vset.pattern.permute.xlu1 %v2206_v42  ;;  %2071 = vset.pattern.permute.xlu0 %v2206_v42 }
 0xb92   :  { %2106 = vtanh.f32 %v1076_v44  ;;  %v1535_v44 = vld [vmem:[%s2676_s9 + $0x8] sm:$0xff] }
 0xb9c   :  { %v2107_v59 = vpop.eup %2106 }
 0xb9d   :  { %1080 = vrot.lane.b32.xlu0 %v2107_v59, %s2205_s20  ;;  %v2047_v59 = vpack.c.bf16 %v1535_v44, %v1534_v56 }
 0xb9f   :  { %2048 = vmatprep.subr.bf16.mxu0 %v2047_v59 }
 0xc0f   :  { %v1081_v1 = vpop.permute.xlu0 %1080 }
 0xc10   :  { %v1083_v48 = vmul.f32 %v1081_v1, %v1078_v63  ;;  %v1536_v63 = vld [vmem:[%s2676_s9 + $0x10] sm:$0xff]  ;;  %v1537_v1 = vld [vmem:[%s2676_s9 + $0x18] sm:$0xff] }
 0xc12   :  { %v1085_v49 = vadd.f32 %v1084_v45, %v1083_v48  ;;  %v2051_v45 = vpack.c.bf16 %v1537_v1, %v1536_v63  ;;  %v1538_v48 = vld [vmem:[%s2676_s9 + $0x20] sm:$0xff] }
 0xc14   :  { %v1093_v51 = vrot.slane %v1085_v49, %v2307_v10 }
 0xc16   :  { %1094 = vrot.lane.b32.xlu1 %v1093_v51, %s2205_s20  ;;  %v1540_v51 = vld [vmem:[%s2676_s9 + $0x30] sm:$0xff] }
 0xc17   :  { %v2059_v58 = vpack.c.bf16 %v1541_v55, %v1540_v51 }
 0xc88   :  { %v1095_v2 = vpop.permute.xlu1 %1094 }
 0xc89   :  { %1098 = vst.msk [vmem:[#allocation4 + $0xa] sm:$0x3] %vm547_vm6, %v1095_v2  ;;  %1855 = vmatmul.mubr.msk.f32.vlgmr.msra.gmra.mrb[6].mxu0 %vm439_vm7, %v1095_v2 }
 0xc8a   :  { %1904 = vmatprep.mubr.msk.f32.mxu0 %vm439_vm7, %v1573_v3  ;;  %2050 = vmatpush3.bf16.msra.mxu0 %v2047_v59 }
 0xc8b   :  { %2052 = vmatprep.subr.bf16.mxu0 %v2051_v45 }
 0xc8e   :  { %2054 = vmatpush3.bf16.msra.mxu0 %v2051_v45 }
 0xc90   :  { %v2564_v46 = vld [vmem:[#allocation4 + $0xa] sm:$0x3] }
 0xc91   :  { %v1339_v50 = vmul.f32 %v2556_v37, %v2564_v46 }
 0xc93   :  { %v1357_v53 = vsel %vm547_vm6, %v1339_v50, 0.0 }
 0xd5c   :  { %v1169_v5 = vpop.f32.mrb[6].mxu0 }
 0xd5d   :  { %v1174_v7 = vadd.f32 %v1169_v5, %v1100_v4  ;;  %v1171_v8 = vpop.f32.mrb[7].mxu0  ;;  %v1335_v4 = vmul.f32 %v2556_v37, %v2536_v54  ;;  %v2598_v5 = vld [vmem:[#allocation4 + $0x8] sm:$0x3]  ;;  %v2609_v54 = vld [vmem:[#allocation5] ss:$0 sm:$0xff] }
 0xd5e   :  { %v1181_v12 = vadd.f32 %v2455_v57, %v1171_v8  ;;  %v1338_v8 = vmul.f32 %v2556_v37, %v2598_v5 }
 0xd5f   :  { %v1856_v9 = vmul.f32 -1.442695, %v1174_v7  ;;  %v1345_v7 = vsel %vm547_vm6, %v1335_v4, 0.0 }
 0xd61   :  { %2108 = vpow2.f32 %v1856_v9 }
 0xd6b   :  { %v2109_v11 = vpop.eup %2108 }
 0xd6c   :  { %v1178_v43 = vadd.f32 1.0, %v2109_v11  ;;  %v1354_v11 = vsel %vm547_vm6, %v1338_v8, 0.0 }
 0xd6e   :  { %2110 = vrcp.f32 %v1178_v43 }
 0xd78   :  { %v2111_v13 = vpop.eup %2110 }
 0xd79   :  { %v1182_v15 = vmul.f32 %v2111_v13, %v1181_v12  ;;  %v1188_v18 = vsub.f32 1.0, %v2111_v13  ;;  %v1194_v20 = vmul.f32 %v2111_v13, %v1085_v49  ;;  %v1539_v49 = vld [vmem:[%s2676_s9 + $0x28] sm:$0xff] }
 0xd7a   :  { %v2055_v52 = vpack.c.bf16 %v1539_v49, %v1538_v48 }
 0xd7b   :  { %v1186_v16 = vadd.f32 %v1184_v14, %v1182_v15 }
 0xd7c   :  { %2056 = vmatprep.subr.bf16.mxu0 %v2055_v52 }
 0xd7d   :  { %2112 = vtanh.f32 %v1186_v16  ;;  %2058 = vmatpush3.bf16.msra.mxu0 %v2055_v52 }
 0xd7e   :  { %2060 = vmatprep.subr.bf16.mxu0 %v2059_v58 }
 0xd81   :  { %2062 = vmatpush3.bf16.msra.mxu0 %v2059_v58 }
 0xd87   :  { %v2113_v17 = vpop.eup %2112 }
 0xd88   :  { %1190 = vrot.lane.b32.xlu0 %v2113_v17, %s2205_s20 }
 0xdfa   :  { %v1191_v19 = vpop.permute.xlu0 %1190 }
 0xdfb   :  { %v1193_v21 = vmul.f32 %v1191_v19, %v1188_v18 }
 0xdfd   :  { %v1195_v22 = vadd.f32 %v1194_v20, %v1193_v21 }
 0xdff   :  { %v1203_v23 = vrot.slane %v1195_v22, %v2307_v10 }
 0xe01   :  { %1204 = vrot.lane.b32.xlu1 %v1203_v23, %s2205_s20 }
 0xe73   :  { %v1205_v24 = vpop.permute.xlu1 %1204 }
 0xe74   :  { %1208 = vst.msk [vmem:[#allocation4 + $0xc] sm:$0x3] %vm547_vm6, %v1205_v24  ;;  %1857 = vmatmul.mubr.msk.f32.vlgmr.msra.gmra.mrb[12].mxu1 %vm439_vm7, %v1205_v24 }
 0xe7b   :  { %v2603_v9 = vld [vmem:[#allocation4 + $0xc] sm:$0x3] }
 0xe7c   :  { %v1340_v43 = vmul.f32 %v2556_v37, %v2603_v9 }
 0xe7e   :  { %v1360_v12 = vsel %vm547_vm6, %v1340_v43, 0.0 }
 0xf47   :  { %v1279_v26 = vpop.f32.mrb[12].mxu1 }
 0xf48   :  { %v1284_v27 = vadd.f32 %v1279_v26, %v1210_v25  ;;  %v1281_v28 = vpop.f32.mrb[13].mxu1 }
 0xf49   :  { %v1291_v32 = vadd.f32 %v2455_v57, %v1281_v28  ;;  %v1348_v57 = vsel %vm547_vm6, %v1336_v40, 0.0 }
 0xf4a   :  { %v1858_v29 = vmul.f32 -1.442695, %v1284_v27 }
 0xf4c   :  { %2114 = vpow2.f32 %v1858_v29 }
 0xf56   :  { %v2115_v30 = vpop.eup %2114 }
 0xf57   :  { %v1288_v31 = vadd.f32 1.0, %v2115_v30 }
 0xf59   :  { %2116 = vrcp.f32 %v1288_v31 }
 0xf63   :  { %v2117_v33 = vpop.eup %2116 }
 0xf64   :  { %v1292_v35 = vmul.f32 %v2117_v33, %v1291_v32  ;;  %v1298_v60 = vsub.f32 1.0, %v2117_v33  ;;  %v1304_v62 = vmul.f32 %v2117_v33, %v1195_v22 }
 0xf66   :  { %v1296_v36 = vadd.f32 %v1294_v34, %v1292_v35 }
 0xf68   :  { %2118 = vtanh.f32 %v1296_v36 }
 0xf72   :  { %v2119_v6 = vpop.eup %2118 }
 0xf73   :  { %1300 = vrot.lane.b32.xlu0 %v2119_v6, %s2205_s20 }
 0xf92   :  { %1343 = vadd.xlane.f32.xlu0 %v1342_v39 }
 0xf96   :  { %1349 = vadd.xlane.f32.xlu0 %v1348_v57 }
 0xf9a   :  { %1352 = vadd.xlane.f32.xlu0 %v1351_v47 }
 0xf9e   :  { %1358 = vadd.xlane.f32.xlu0 %v1357_v53 }
 0xfe5   :  { %v1301_v61 = vpop.permute.xlu0 %1300 }
 0xfe6   :  { %v1303_v0 = vmul.f32 %v1301_v61, %v1298_v60 }
 0xfe8   :  { %v1305_v2 = vadd.f32 %v1304_v62, %v1303_v0 }
 0xfea   :  { %v1313_v3 = vrot.slane %v1305_v2, %v2307_v10 }
 0xfec   :  { %1314 = vrot.lane.b32.xlu1 %v1313_v3, %s2205_s20 }
0x1010   :  { %1346 = vadd.xlane.f32.xlu1 %v1345_v7 }
0x1014   :  { %1355 = vadd.xlane.f32.xlu1 %v1354_v11 }
0x1018   :  { %1361 = vadd.xlane.f32.xlu1 %v1360_v12 }
0x101f   :  { %v1344_v13 = vpop.xlane.xlu0 %1343 }
0x1020   :  { %v1373_v14 = vadd.f32 %v2609_v54, %v1344_v13 }
0x1022   :  { %v1382_v15 = vsel %vm1381_vm8, %v1373_v14, -inf }
0x1023   :  { %v1383_v16 = vrot.slane %v1382_v15, 4  ;;  %v1350_v17 = vpop.xlane.xlu0 %1349 }
0x1024   :  { %v1375_v18 = vadd.f32 %v2609_v54, %v1350_v17 }
0x1025   :  { %v1384_v19 = vmax.f32 %v1382_v15, %v1383_v16 }
0x1026   :  { %v1396_v20 = vsel %vm1381_vm8, %v1375_v18, -inf }
0x1027   :  { %v1385_v21 = vrot.slane %v1384_v19, 2  ;;  %v1397_v22 = vrot.slane %v1396_v20, 4  ;;  %v1353_v23 = vpop.xlane.xlu0 %1352 }
0x1028   :  { %v1376_v24 = vadd.f32 %v2609_v54, %v1353_v23 }
0x1029   :  { %v1386_v25 = vmax.f32 %v1384_v19, %v1385_v21  ;;  %v1398_v26 = vmax.f32 %v1396_v20, %v1397_v22  ;;  %v1574_v19 = vcombine.low %v2598_v5, %v2564_v46 }
0x102a   :  { %v1403_v27 = vsel %vm1381_vm8, %v1376_v24, -inf }
0x102b   :  { %v1387_v28 = vrot.slane %v1386_v25, 1  ;;  %v1399_v29 = vrot.slane %v1398_v26, 2  ;;  %v1404_v30 = vrot.slane %v1403_v27, 4  ;;  %v1582_v23 = vrot.slane %v1574_v19, %v2307_v10 }
0x102d   :  { %v1388_v31 = vmax.f32 %v1386_v25, %v1387_v28  ;;  %v1400_v32 = vmax.f32 %v1398_v26, %v1399_v29  ;;  %v1405_v33 = vmax.f32 %v1403_v27, %v1404_v30  ;;  %v1359_v27 = vpop.xlane.xlu0 %1358 }
0x102e   :  { %v1378_v28 = vadd.f32 %v2609_v54, %v1359_v27 }
0x102f   :  { %v1438_v34 = vsub.f32 %v1373_v14, %v1388_v31  ;;  %v1401_v35 = vrot.slane %v1400_v32, 1  ;;  %v1406_v36 = vrot.slane %v1405_v33, 2 }
0x1030   :  { %v1417_v46 = vsel %vm1381_vm8, %v1378_v28, -inf }
0x1031   :  { %v1446_v6 = vmul.f32 1.442695, %v1438_v34  ;;  %v1402_v38 = vmax.f32 %v1400_v32, %v1401_v35  ;;  %v1407_v39 = vmax.f32 %v1405_v33, %v1406_v36  ;;  %v1418_v5 = vrot.slane %v1417_v46, 4 }
0x1033   :  { %2120 = vpow2.f32 %v1446_v6  ;;  %v1440_v40 = vsub.f32 %v1375_v18, %v1402_v38  ;;  %v1408_v57 = vrot.slane %v1407_v39, 1  ;;  %v1419_v29 = vmax.f32 %v1417_v46, %v1418_v5 }
0x1035   :  { %v1450_v41 = vmul.f32 1.442695, %v1440_v40  ;;  %v1409_v47 = vmax.f32 %v1407_v39, %v1408_v57 }
0x1037   :  { %2122 = vpow2.f32 %v1450_v41  ;;  %v1441_v50 = vsub.f32 %v1376_v24, %v1409_v47 }
0x1039   :  { %v1452_v53 = vmul.f32 1.442695, %v1441_v50 }
0x103b   :  { %2124 = vpow2.f32 %v1452_v53 }
0x103d   :  { %v2121_v42 = vpop.eup %2120 }
0x103e   :  { %v1462_v56 = vsel %vm1381_vm8, %v2121_v42, 0.0 }
0x103f   :  { %v1463_v44 = vrot.slane %v1462_v56, 4 }
0x1041   :  { %v2123_v59 = vpop.eup %2122  ;;  %v1464_v63 = vadd.f32 %v1463_v44, %v1462_v56 }
0x1042   :  { %v1476_v1 = vsel %vm1381_vm8, %v2123_v59, 0.0 }
0x1043   :  { %v1465_v45 = vrot.slane %v1464_v63, 2  ;;  %v1477_v48 = vrot.slane %v1476_v1, 4 }
0x1045   :  { %v2125_v49 = vpop.eup %2124  ;;  %v1478_v51 = vadd.f32 %v1477_v48, %v1476_v1  ;;  %v1466_v52 = vadd.f32 %v1465_v45, %v1464_v63 }
0x1046   :  { %v1483_v55 = vsel %vm1381_vm8, %v2125_v49, 0.0 }
0x1047   :  { %v1479_v58 = vrot.slane %v1478_v51, 2  ;;  %v1484_v60 = vrot.slane %v1483_v55, 4  ;;  %v1467_v61 = vrot.slane %v1466_v52, 1 }
0x1049   :  { %v1485_v62 = vadd.f32 %v1484_v60, %v1483_v55  ;;  %v1468_v0 = vadd.f32 %v1467_v61, %v1466_v52  ;;  %v1480_v2 = vadd.f32 %v1479_v58, %v1478_v51 }
0x104b   :  { %v1486_v3 = vrot.slane %v1485_v62, 2  ;;  %2126 = vrcp.f32 %v1468_v0  ;;  %v1481_v4 = vrot.slane %v1480_v2, 1 }
0x104d   :  { %v1482_v7 = vadd.f32 %v1481_v4, %v1480_v2  ;;  %v1487_v8 = vadd.f32 %v1486_v3, %v1485_v62 }
0x104f   :  { %2128 = vrcp.f32 %v1482_v7  ;;  %v1488_v11 = vrot.slane %v1487_v8, 1 }
0x1051   :  { %v1489_v43 = vadd.f32 %v1488_v11, %v1487_v8 }
0x1053   :  { %2130 = vrcp.f32 %v1489_v43 }
0x1055   :  { %v2127_v12 = vpop.eup %2126 }
0x1056   :  { %v1519_v13 = vmul.f32 %v2127_v12, %v2121_v42 }
0x1058   :  { %1724 = vperm.xlu1 %2070, %v1519_v13  }
0x1059   :  { %v2129_v14 = vpop.eup %2128 }
0x105a   :  { %v1523_v15 = vmul.f32 %v2129_v14, %v2123_v59 }
0x105c   :  { %1734 = vperm.xlu1 %2070, %v1523_v15  }
0x105d   :  { %v2131_v16 = vpop.eup %2130 }
0x105e   :  { %v1315_v17 = vpop.permute.xlu1 %1314  ;;  %v1525_v18 = vmul.f32 %v2131_v16, %v2125_v49 }
0x105f   :  { %1318 = vst.msk [vmem:[#allocation4 + $0xe] sm:$0x3] %vm547_vm6, %v1315_v17 }
0x1060   :  { %1739 = vperm.xlu1 %2070, %v1525_v18  }
0x1066   :  { %v1326_v20 = vld [vmem:[#allocation4 + $0xe] sm:$0x3] }
0x1067   :  { %v1341_v21 = vmul.f32 %v2556_v37, %v1326_v20  ;;  %v1575_v22 = vcombine.low %v2603_v9, %v1326_v20  ;;  %v1420_v37 = vrot.slane %v1419_v29, 2 }
0x1069   :  { %v1363_v24 = vsel %vm547_vm6, %v1341_v21, 0.0  ;;  %v1589_v25 = vrot.slane %v1575_v22, %v2307_v10  ;;  %v1421_v30 = vmax.f32 %v1419_v29, %v1420_v37 }
0x106a   :  { %1364 = vadd.xlane.f32.xlu0 %v1363_v24 }
0x106b   :  { %v1590_v26 = vcombine.low %v1582_v23, %v1589_v25  ;;  %v1422_v9 = vrot.slane %v1421_v30, 1 }
0x106d   :  { %1905 = vmatmul.mubr.msk.f32.vlgmr.msra.gmra.mrb[8].mxu0 %vm439_vm7, %v1590_v26  ;;  %v1423_v31 = vmax.f32 %v1421_v30, %v1422_v9 }
0x106f   :  { %v1443_v34 = vsub.f32 %v1378_v28, %v1423_v31 }
0x1071   :  { %v1456_v39 = vmul.f32 1.442695, %v1443_v34 }
0x1073   :  { %2132 = vpow2.f32 %v1456_v39 }
0x107d   :  { %v2133_v62 = vpop.eup %2132 }
0x107e   :  { %v1497_v7 = vsel %vm1381_vm8, %v2133_v62, 0.0 }
0x107f   :  { %v1498_v11 = vrot.slane %v1497_v7, 4 }
0x1081   :  { %v1499_v13 = vadd.f32 %v1498_v11, %v1497_v7 }
0x1083   :  { %v1500_v17 = vrot.slane %v1499_v13, 2 }
0x1085   :  { %v1501_v25 = vadd.f32 %v1500_v17, %v1499_v13 }
0x1087   :  { %v1502_v30 = vrot.slane %v1501_v25, 1 }
0x109d   :  { %v1347_v32 = vpop.xlane.xlu1 %1346 }
0x109e   :  { %v1374_v33 = vadd.f32 %v2609_v54, %v1347_v32 }
0x10a0   :  { %v1389_v35 = vsel %vm1381_vm8, %v1374_v33, -inf }
0x10a1   :  { %v1390_v36 = vrot.slane %v1389_v35, 4  ;;  %v1356_v6 = vpop.xlane.xlu1 %1355 }
0x10a2   :  { %v1377_v38 = vadd.f32 %v2609_v54, %v1356_v6 }
0x10a3   :  { %v1391_v40 = vmax.f32 %v1389_v35, %v1390_v36 }
0x10a4   :  { %v1410_v57 = vsel %vm1381_vm8, %v1377_v38, -inf }
0x10a5   :  { %v1392_v41 = vrot.slane %v1391_v40, 2  ;;  %v1411_v47 = vrot.slane %v1410_v57, 4  ;;  %v1362_v50 = vpop.xlane.xlu1 %1361 }
0x10a6   :  { %v1379_v53 = vadd.f32 %v2609_v54, %v1362_v50 }
0x10a7   :  { %v1393_v42 = vmax.f32 %v1391_v40, %v1392_v41  ;;  %v1412_v56 = vmax.f32 %v1410_v57, %v1411_v47 }
0x10a8   :  { %v1424_v44 = vsel %vm1381_vm8, %v1379_v53, -inf }
0x10a9   :  { %v1394_v59 = vrot.slane %v1393_v42, 1  ;;  %v1413_v63 = vrot.slane %v1412_v56, 2  ;;  %v1425_v1 = vrot.slane %v1424_v44, 4 }
0x10ab   :  { %v1395_v45 = vmax.f32 %v1393_v42, %v1394_v59  ;;  %v1414_v48 = vmax.f32 %v1412_v56, %v1413_v63  ;;  %v1426_v49 = vmax.f32 %v1424_v44, %v1425_v1 }
0x10ad   :  { %v1439_v51 = vsub.f32 %v1374_v33, %v1395_v45  ;;  %v1415_v52 = vrot.slane %v1414_v48, 1  ;;  %v1427_v55 = vrot.slane %v1426_v49, 2  ;;  %v1503_v33 = vadd.f32 %v1502_v30, %v1501_v25 }
0x10af   :  { %v1448_v58 = vmul.f32 1.442695, %v1439_v51  ;;  %v1416_v60 = vmax.f32 %v1414_v48, %v1415_v52  ;;  %v1428_v61 = vmax.f32 %v1426_v49, %v1427_v55 }
0x10b1   :  { %2134 = vpow2.f32 %v1448_v58  ;;  %v1442_v0 = vsub.f32 %v1377_v38, %v1416_v60  ;;  %v1429_v2 = vrot.slane %v1428_v61, 1 }
0x10b3   :  { %v1454_v3 = vmul.f32 1.442695, %v1442_v0  ;;  %v1430_v4 = vmax.f32 %v1428_v61, %v1429_v2 }
0x10b5   :  { %2136 = vpow2.f32 %v1454_v3  ;;  %v1444_v8 = vsub.f32 %v1379_v53, %v1430_v4  ;;  %v1861_v4 = vld [vmem:[%s2677_s10] ss:$0 sm:$0xff] }
0x10b7   :  { %v1458_v43 = vmul.f32 1.442695, %v1444_v8 }
0x10b9   :  { %2138 = vpow2.f32 %v1458_v43 }
0x10bb   :  { %v2135_v12 = vpop.eup %2134 }
0x10bc   :  { %v1469_v14 = vsel %vm1381_vm8, %v2135_v12, 0.0 }
0x10bd   :  { %v1470_v15 = vrot.slane %v1469_v14, 4 }
0x10bf   :  { %v2137_v16 = vpop.eup %2136  ;;  %v1471_v18 = vadd.f32 %v1470_v15, %v1469_v14 }
0x10c0   :  { %v1490_v19 = vsel %vm1381_vm8, %v2137_v16, 0.0 }
0x10c1   :  { %v1472_v20 = vrot.slane %v1471_v18, 2  ;;  %v1491_v21 = vrot.slane %v1490_v19, 4 }
0x10c3   :  { %v2139_v22 = vpop.eup %2138  ;;  %v1492_v23 = vadd.f32 %v1491_v21, %v1490_v19  ;;  %v1473_v24 = vadd.f32 %v1472_v20, %v1471_v18 }
0x10c4   :  { %v1504_v26 = vsel %vm1381_vm8, %v2139_v22, 0.0 }
0x10c5   :  { %v1493_v27 = vrot.slane %v1492_v23, 2  ;;  %v1505_v28 = vrot.slane %v1504_v26, 4  ;;  %v1474_v46 = vrot.slane %v1473_v24, 1 }
0x10c7   :  { %v1506_v5 = vadd.f32 %v1505_v28, %v1504_v26  ;;  %v1475_v29 = vadd.f32 %v1474_v46, %v1473_v24  ;;  %v1494_v37 = vadd.f32 %v1493_v27, %v1492_v23  ;;  %v1770_v46 = vld [vmem:[#allocation2] sm:$0x3] }
0x10c9   :  { %v1507_v9 = vrot.slane %v1506_v5, 2  ;;  %2140 = vrcp.f32 %v1475_v29  ;;  %v1495_v31 = vrot.slane %v1494_v37, 1 }
0x10cb   :  { %v1496_v32 = vadd.f32 %v1495_v31, %v1494_v37  ;;  %v1508_v34 = vadd.f32 %v1507_v9, %v1506_v5  ;;  %v1771_v9 = vld [vmem:[#allocation2 + $0x2] sm:$0x3]  ;;  %v1772_v31 = vld [vmem:[#allocation2 + $0x4] sm:$0x3] }
0x10cd   :  { %2142 = vrcp.f32 %v1496_v32  ;;  %v1509_v35 = vrot.slane %v1508_v34, 1 }
0x10ce   :  { %2144 = vrcp.f32 %v1503_v33 }
0x10cf   :  { %v1510_v36 = vadd.f32 %v1509_v35, %v1508_v34 }
0x10d1   :  { %2146 = vrcp.f32 %v1510_v36 }
0x10d3   :  { %v2141_v6 = vpop.eup %2140 }
0x10d4   :  { %v1521_v38 = vmul.f32 %v2141_v6, %v2135_v12  ;;  %v1773_v6 = vld [vmem:[#allocation2 + $0x6] sm:$0x3] }
0x10d6   :  { %1729 = vperm.xlu0 %2071, %v1521_v38  }
0x10d7   :  { %v2143_v39 = vpop.eup %2142  ;;  %v1725_v17 = vpop.permute.xlu1 %1724 }
0x10d8   :  { %v1527_v40 = vmul.f32 %v2143_v39, %v2137_v16  ;;  %v2145_v57 = vpop.eup %2144 }
0x10d9   :  { %v1529_v41 = vmul.f32 %v2145_v57, %v2133_v62 }
0x10da   :  { %1744 = vperm.xlu1 %2070, %v1527_v40  }
0x10db   :  { %v2147_v47 = vpop.eup %2146  ;;  %v1735_v19 = vpop.permute.xlu1 %1734 }
0x10dc   :  { %v1531_v50 = vmul.f32 %v2147_v47, %v2139_v22 }
0x10de   :  { %1749 = vperm.xlu1 %2070, %v1529_v41   ;;  %v1774_v41 = vld [vmem:[#allocation2 + $0x8] sm:$0x3] }
0x10df   :  { %v1740_v27 = vpop.permute.xlu1 %1739 }
0x10e2   :  { %1754 = vperm.xlu1 %2070, %v1531_v50  }
0x10f7   :  { %v1365_v53 = vpop.xlane.xlu0 %1364 }
0x10f8   :  { %v1380_v42 = vadd.f32 %v2609_v54, %v1365_v53 }
0x10fa   :  { %v1431_v56 = vsel %vm1381_vm8, %v1380_v42, -inf }
0x10fb   :  { %v1432_v44 = vrot.slane %v1431_v56, 4 }
0x10fd   :  { %v1433_v59 = vmax.f32 %v1431_v56, %v1432_v44 }
0x10ff   :  { %v1434_v63 = vrot.slane %v1433_v59, 2 }
0x1101   :  { %v1435_v1 = vmax.f32 %v1433_v59, %v1434_v63 }
0x1103   :  { %v1436_v45 = vrot.slane %v1435_v1, 1 }
0x1105   :  { %v1437_v48 = vmax.f32 %v1435_v1, %v1436_v45  ;;  %v1775_v1 = vld [vmem:[#allocation2 + $0xa] sm:$0x3] }
0x1107   :  { %v1445_v49 = vsub.f32 %v1380_v42, %v1437_v48 }
0x1109   :  { %v1460_v51 = vmul.f32 1.442695, %v1445_v49 }
0x110b   :  { %2148 = vpow2.f32 %v1460_v51 }
0x1115   :  { %v2149_v52 = vpop.eup %2148 }
0x1116   :  { %v1511_v55 = vsel %vm1381_vm8, %v2149_v52, 0.0 }
0x1117   :  { %v1512_v58 = vrot.slane %v1511_v55, 4 }
0x1119   :  { %v1513_v60 = vadd.f32 %v1512_v58, %v1511_v55 }
0x111b   :  { %v1514_v61 = vrot.slane %v1513_v60, 2 }
0x111d   :  { %v1515_v62 = vadd.f32 %v1514_v61, %v1513_v60  ;;  %v1776_v61 = vld [vmem:[#allocation2 + $0xc] sm:$0x3] }
0x111f   :  { %v1516_v0 = vrot.slane %v1515_v62, 1 }
0x1121   :  { %v1517_v54 = vadd.f32 %v1516_v0, %v1515_v62 }
0x1123   :  { %2150 = vrcp.f32 %v1517_v54 }
0x112d   :  { %v2151_v2 = vpop.eup %2150 }
0x112e   :  { %v1533_v3 = vmul.f32 %v2151_v2, %v2149_v52 }
0x1130   :  { %1759 = vperm.xlu1 %2070, %v1533_v3  }
0x1140   :  { %v1906_v7 = vpop.f32.mrb[8].mxu0 }
0x1141   :  { %v1661_v8 = vpop.f32.mrb[9].mxu0  ;;  %v1667_v15 = vadd.f32 %v1906_v7, %v1861_v4 }
0x1142   :  { %v1662_v11 = vadd.f32 %v1861_v4, %v1661_v8  ;;  %v1777_v8 = vld [vmem:[#allocation2 + $0xe] sm:$0x3] }
0x1143   :  { %v1696_v18 = vrot.slane %v1667_v15, %v2307_v10  ;;  %v1689_v20 = vcombine.high %v1667_v15, %v1667_v15 }
0x1144   :  { %v1672_v43 = vcombine.high %v1662_v11, %v1662_v11  ;;  %v1679_v12 = vrot.slane %v1662_v11, %v2307_v10 }
0x1145   :  { %v1704_v21 = vcombine.high %v1696_v18, %v1696_v18  ;;  %v1703_v24 = vrot.slane %v1689_v20, %v2307_v10 }
0x1146   :  { %v1686_v13 = vrot.slane %v1672_v43, %v2307_v10  ;;  %v1687_v14 = vcombine.high %v1679_v12, %v1679_v12  ;;  %2152 = vtanh.f32 %v1679_v12  ;;  %v1864_v12 = vld [vmem:[%s2678_s11] ss:$0 sm:$0xff] }
0x1147   :  { %v1705_v2 = vcombine.high %v1703_v24, %v1703_v24 }
0x1148   :  { %v1688_v16 = vcombine.high %v1686_v13, %v1686_v13  ;;  %2154 = vtanh.f32 %v1687_v14 }
0x1149   :  { %2156 = vtanh.f32 %v1686_v13 }
0x114a   :  { %2158 = vtanh.f32 %v1688_v16  ;;  %v1865_v16 = vld [vmem:[#allocation6] ss:$0 sm:$0xff] }
0x114b   :  { %2160 = vtanh.f32 %v1696_v18 }
0x114c   :  { %2162 = vtanh.f32 %v1704_v21 }
0x114d   :  { %2164 = vtanh.f32 %v1703_v24 }
0x114e   :  { %2166 = vtanh.f32 %v1705_v2 }
0x1150   :  { %v2153_v22 = vpop.eup %2152 }
0x1151   :  { %v1762_v23 = vmul.f32 %v2153_v22, %v1725_v17 }
0x1152   :  { %v2155_v25 = vpop.eup %2154 }
0x1153   :  { %v2157_v26 = vpop.eup %2156  ;;  %v1778_v30 = vmul.f32 %v1770_v46, %v1762_v23 }
0x1154   :  { %v2159_v5 = vpop.eup %2158  ;;  %v1764_v37 = vmul.f32 %v2157_v26, %v1735_v19 }
0x1155   :  { %v1730_v28 = vpop.permute.xlu0 %1729  ;;  %v1765_v32 = vmul.f32 %v2159_v5, %v1740_v27  ;;  %v2161_v35 = vpop.eup %2160  ;;  %v1786_v10 = vsel %vm245_vm2, %v1778_v30, 0.0 }
0x1156   :  { %v1763_v29 = vmul.f32 %v2155_v25, %v1730_v28  ;;  %v1780_v34 = vmul.f32 %v1772_v31, %v1764_v37  ;;  %v2163_v53 = vpop.eup %2162 }
0x1157   :  { %v1781_v40 = vmul.f32 %v1773_v6, %v1765_v32  ;;  %v2165_v49 = vpop.eup %2164 }
0x1158   :  { %v1779_v33 = vmul.f32 %v1771_v9, %v1763_v29  ;;  %v1789_v47 = vsel %vm245_vm2, %v1780_v34, 0.0  ;;  %v2167_v3 = vpop.eup %2166 }
0x1159   :  { %v1745_v36 = vpop.permute.xlu1 %1744  ;;  %v1791_v44 = vsel %vm245_vm2, %v1781_v40, 0.0 }
0x115a   :  { %v1787_v38 = vsel %vm245_vm2, %v1779_v33, 0.0  ;;  %v1766_v39 = vmul.f32 %v2161_v35, %v1745_v36 }
0x115b   :  { %v1788_v57 = vadd.f32 %v1787_v38, %v1786_v10 }
0x115c   :  { %v1782_v50 = vmul.f32 %v1774_v41, %v1766_v39 }
0x115d   :  { %v1790_v42 = vadd.f32 %v1789_v47, %v1788_v57  ;;  %v1750_v56 = vpop.permute.xlu1 %1749 }
0x115e   :  { %v1767_v59 = vmul.f32 %v2163_v53, %v1750_v56  ;;  %v1793_v45 = vsel %vm245_vm2, %v1782_v50, 0.0 }
0x115f   :  { %v1792_v63 = vadd.f32 %v1791_v44, %v1790_v42 }
0x1160   :  { %v1783_v48 = vmul.f32 %v1775_v1, %v1767_v59 }
0x1161   :  { %v1794_v51 = vadd.f32 %v1793_v45, %v1792_v63  ;;  %v1755_v52 = vpop.permute.xlu1 %1754 }
0x1162   :  { %v1795_v55 = vsel %vm245_vm2, %v1783_v48, 0.0  ;;  %v1768_v58 = vmul.f32 %v2165_v49, %v1755_v52 }
0x1163   :  { %v1796_v60 = vadd.f32 %v1795_v55, %v1794_v51 }
0x1164   :  { %v1784_v62 = vmul.f32 %v1776_v61, %v1768_v58 }
0x1166   :  { %v1797_v0 = vsel %vm245_vm2, %v1784_v62, 0.0 }
0x1167   :  { %v1798_v54 = vadd.f32 %v1797_v0, %v1796_v60 }
0x11af   :  { %v1760_v4 = vpop.permute.xlu1 %1759 }
0x11b0   :  { %v1769_v7 = vmul.f32 %v2167_v3, %v1760_v4 }
0x11b2   :  { %v1785_v11 = vmul.f32 %v1777_v8, %v1769_v7 }
0x11b4   :  { %v1799_v43 = vsel %vm245_vm2, %v1785_v11, 0.0 }
0x11b5   :  { %v1800_v13 = vadd.f32 %v1799_v43, %v1798_v54 }
0x11b7   :  { %v1808_v14 = vmul.f32 %v1864_v12, %v1800_v13 }
0x11b9   :  { %v1809_v15 = vsel %vm245_vm2, %v1808_v14, 0.0 }
0x11ba   :  { %1810 = vadd.xlane.f32.xlu1 %v1809_v15 }
0x1247   :  { %v1811_v17 = vpop.xlane.xlu1 %1810 }
0x1248   :  { %v1819_v18 = vadd.f32 %v1865_v16, %v1811_v17 }
0x124a   :  { %v1866_v19 = vmul.f32 -1.442695, %v1819_v18 }
0x124c   :  { %2168 = vpow2.f32 %v1866_v19 }
0x1256   :  { %v2169_v20 = vpop.eup %2168 }
0x1257   :  { %v1823_v21 = vadd.f32 1.0, %v2169_v20 }
0x1259   :  { %2170 = vrcp.f32 %v1823_v21 }
0x1263   :  { %v2171_v22 = vpop.eup %2170 }
0x1264   :  { %v1826_v23 = vsub.f32 %v2171_v22, %v2171_v22 }
0x1266   :  { %v1827_v24 = vmul.f32 1.442695, %v1826_v23 }
0x1268   :  { %2172 = vpow2.f32 %v1827_v24 }
0x1272   :  { %v2173_v25 = vpop.eup %2172 }
0x1273   :  { %2174 = vrcp.f32 %v2173_v25 }
0x127d   :  { %v2175_v26 = vpop.eup %2174 }
0x127e   :  { %v1831_v27 = vmul.f32 %v2175_v26, %v2173_v25 }
0x1280   :  { %1832 = vst.msk [vmem:[%s2679_s13] sm:$0x3] %vm1381_vm8, %v1831_v27 }
0x1281   :  { %1837 = vsyncpa [#allocation8], 1 }

</bundles_post_ra>
